<compile_context>
chip_gen: v6e
topology: v6e:2x2x1
jax: 0.10.0
libtpu: 0.0.40
codegen_flags: <defaults>
</compile_context>

<pallas_src>
import jax
import jax.numpy as jnp
from jax.experimental import pallas as pl
from jax.experimental.pallas import tpu as pltpu

FEAT_DIM = 8192          # per-backbone feature dim (fc1 in = 2 * 8192)
HIDDEN = 512             # fc1 out
NUM_CLASSES = 16         # keyframe_localization task
UNSQUEEZE_DIM = 1        # keyframe_localization task
C_PAD = 128              # lane-dense padded class dim for the kernel output


def fusion_kernel(x_ref, w1_ref, b1_ref, w2_ref, out_ref, acc_ref):
    """grid = (hidden_blocks, K-tiles).

    Axis 0 ("parallel") tiles the fc1 output dim (HIDDEN): each block produces
    a partial fc2 output (summed outside; on v7x the two blocks land on the
    two TensorCores).  Axis 1 ("arbitrary") tiles the 2*8192-wide contraction;
    acc_ref accumulates this hidden block's fc1 pre-activation in f32.
    """
    k = pl.program_id(1)

    @pl.when(k == 0)
    def _():
        acc_ref[...] = jnp.broadcast_to(
            b1_ref[...], acc_ref.shape).astype(jnp.float32)

    # bf16 x bf16 -> f32 accumulation on the MXU (single dot per step).
    acc_ref[...] += jnp.dot(x_ref[...], w1_ref[...],
                            preferred_element_type=jnp.float32)

    @pl.when(k == pl.num_programs(1) - 1)
    def _():
        h = jnp.maximum(acc_ref[...], 0.0)                      # ReLU
        out_ref[0] = jnp.dot(
            h, w2_ref[...], preferred_element_type=jnp.float32
        ).astype(out_ref.dtype)


def prepare_fusion_params(w1, b1, w2, b2):
    """One-time parameter prep (do at init, NOT per call).

    * W1 stored in bf16: halves the HBM weight stream that dominates runtime
      (accumulation stays f32 in-kernel -- a deliberate precision tradeoff).
    * W2 zero-padded to a lane-dense 128-wide class dim.
    """
    assert w1.shape == (2 * FEAT_DIM, HIDDEN)
    w1_bf16 = w1.astype(jnp.bfloat16)
    b1_row = b1.reshape(1, HIDDEN).astype(jnp.float32)
    w2_pad = jnp.zeros((HIDDEN, C_PAD), jnp.float32).at[:, :NUM_CLASSES].set(w2)
    b2_f32 = b2.astype(jnp.float32)
    return w1_bf16, b1_row, w2_pad, b2_f32


def task_fusion_lf_linear(pnr_feat, oscc_feat, w1_bf16, b1_row, w2_pad, b2,
                          *, tk=4096, hidden_blocks=2):
    """pnr_feat: (B, T, 8192), oscc_feat: (B, 1, 8192).

    Returns (B, 1, NUM_CLASSES)  (== out.unsqueeze(1) in torch).
    """
    B, T, D = pnr_feat.shape
    K = 2 * D
    assert D == FEAT_DIM
    assert w1_bf16.shape == (K, HIDDEN) and w1_bf16.dtype == jnp.bfloat16
    assert K % tk == 0 and tk % 128 == 0
    assert HIDDEN % hidden_blocks == 0
    hh = HIDDEN // hidden_blocks
    assert hh % 128 == 0

    # mean over T + squeeze(1) + concat: a few hundred KiB of activations; the
    # 16 MiB bf16 W1 stream handled by the Pallas kernel below dominates.
    x = jnp.concatenate([pnr_feat.mean(axis=1), oscc_feat[:, 0, :]], axis=1)
    x = x.astype(jnp.bfloat16)                                   # (B, 2D)

    grid = (hidden_blocks, K // tk)

    partials = pl.pallas_call(
        fusion_kernel,
        out_shape=jax.ShapeDtypeStruct((hidden_blocks, B, C_PAD), jnp.float32),
        grid_spec=pltpu.PrefetchScalarGridSpec(
            num_scalar_prefetch=0,
            grid=grid,
            in_specs=[
                pl.BlockSpec((B, tk), lambda h, k: (0, k)),       # x   (bf16)
                pl.BlockSpec((tk, hh), lambda h, k: (k, h)),      # W1  (bf16, whole array, no wrapper slices)
                pl.BlockSpec((1, hh), lambda h, k: (0, h)),       # b1
                pl.BlockSpec((hh, C_PAD), lambda h, k: (h, 0)),   # W2  (padded)
            ],
            out_specs=pl.BlockSpec((1, B, C_PAD), lambda h, k: (h, 0, 0)),
            scratch_shapes=[pltpu.VMEM((B, hh), jnp.float32)],
        ),
        compiler_params=pltpu.CompilerParams(
            dimension_semantics=("parallel", "arbitrary"),
            vmem_limit_bytes=32 * 1024 * 1024),
    )(x, w1_bf16, b1_row, w2_pad)

    # Sum partial fc2 outputs over the hidden blocks, add b2 once, strip the
    # lane padding, then unsqueeze(self.unsqueeze_dim) with unsqueeze_dim == 1.
    out = partials.sum(axis=0)[:, :NUM_CLASSES] + b2
    return jnp.expand_dims(out, UNSQUEEZE_DIM)


def _reference(pnr_feat, oscc_feat, w1, b1, w2, b2, *, quantize_bf16=False):
    feat = jnp.concatenate([pnr_feat.mean(axis=1), oscc_feat[:, 0, :]], axis=1)
    if quantize_bf16:
        feat = feat.astype(jnp.bfloat16).astype(jnp.float32)
        w1 = w1.astype(jnp.bfloat16).astype(jnp.float32)
    h = jnp.maximum(feat @ w1 + b1, 0.0)
    out = h @ w2 + b2
    return jnp.expand_dims(out, UNSQUEEZE_DIM)


if __name__ == "__main__":
    key = jax.random.PRNGKey(0)
    k_pnr, k_oscc, k_w1, k_b1, k_w2, k_b2 = jax.random.split(key, 6)

    B, T = 2, 8  # small batch / temporal extent of the PNR feature sequence

    # synthetic backbone features (stand-ins for pnr_model / oscc_model outputs)
    pnr_feat = jax.random.normal(k_pnr, (B, T, FEAT_DIM), dtype=jnp.float32)
    oscc_feat = jax.random.normal(k_oscc, (B, 1, FEAT_DIM), dtype=jnp.float32)

    # fc1 / fc2 parameters (torch Linear shapes, stored transposed: (in, out))
    w1 = jax.random.normal(k_w1, (2 * FEAT_DIM, HIDDEN), dtype=jnp.float32) * 0.01
    b1 = jax.random.normal(k_b1, (HIDDEN,), dtype=jnp.float32) * 0.01
    w2 = jax.random.normal(k_w2, (HIDDEN, NUM_CLASSES), dtype=jnp.float32) * 0.05
    b2 = jax.random.normal(k_b2, (NUM_CLASSES,), dtype=jnp.float32) * 0.05

    # one-time param prep (bf16 W1, padded W2)
    params = prepare_fusion_params(w1, b1, w2, b2)

    fwd = jax.jit(lambda pnr, oscc: task_fusion_lf_linear(pnr, oscc, *params))
    out = jax.block_until_ready(fwd(pnr_feat, oscc_feat))

    # tight check against a reference using the same bf16-quantized fc1 inputs
    ref_q = _reference(pnr_feat, oscc_feat, w1, b1, w2, b2, quantize_bf16=True)
    # looser check against pure-f32 torch semantics (bounds the bf16 tradeoff)
    ref_f = _reference(pnr_feat, oscc_feat, w1, b1, w2, b2, quantize_bf16=False)

    assert out.shape == (B, 1, NUM_CLASSES), out.shape
    assert jnp.allclose(out, ref_q, rtol=1e-4, atol=1e-4), \
        float(jnp.max(jnp.abs(out - ref_q)))
    assert jnp.allclose(out, ref_f, rtol=5e-2, atol=5e-2), \
        float(jnp.max(jnp.abs(out - ref_f)))

    print("KERNEL_OK")
</pallas_src>

<mosaic_0001>
module attributes {stable_mosaic.version = 11 : i64} {
  func.func @fusion_kernel(%arg0: i32, %arg1: i32, %arg2: memref<2x4096xbf16, #tpu.memory_space<vmem>>, %arg3: memref<4096x256xbf16, #tpu.memory_space<vmem>>, %arg4: memref<1x256xf32, #tpu.memory_space<vmem>>, %arg5: memref<256x128xf32, #tpu.memory_space<vmem>>, %arg6: memref<1x2x128xf32, #tpu.memory_space<vmem>>, %arg7: memref<2x256xf32, #tpu.memory_space<vmem>>) attributes {dimension_semantics = [#tpu.dimension_semantics<parallel>, #tpu.dimension_semantics<arbitrary>], iteration_bounds = array<i64: 2, 4>, scalar_prefetch = 0 : i64, scratch_operands = 1 : i64, tpu.core_type = #tpu.core_type<tc>, window_params = [{transform_indices = @transform_0, window_bounds = array<i64: 2, 4096>}, {transform_indices = @transform_1, window_bounds = array<i64: 4096, 256>}, {transform_indices = @transform_2, window_bounds = array<i64: 1, 256>}, {transform_indices = @transform_3, window_bounds = array<i64: 256, 128>}, {transform_indices = @transform_4, window_bounds = array<i64: 1, 2, 128>}]} {
    %c0_i32 = arith.constant 0 : i32
    %0 = arith.cmpi eq, %arg1, %c0_i32 : i32
    %1 = arith.extui %0 : i1 to i32
    %c0_i32_0 = arith.constant 0 : i32
    %2 = arith.cmpi ne, %1, %c0_i32_0 : i32
    scf.if %2 {
      %c0_9 = arith.constant 0 : index
      %c0_10 = arith.constant 0 : index
      %12 = vector.load %arg4[%c0_9, %c0_10] : memref<1x256xf32, #tpu.memory_space<vmem>>, vector<1x256xf32>
      %13 = vector.shape_cast %12 : vector<1x256xf32> to vector<1x256xf32>
      %14 = vector.broadcast %13 : vector<1x256xf32> to vector<2x256xf32>
      %c0_11 = arith.constant 0 : index
      %c0_12 = arith.constant 0 : index
      %15 = vector.load %arg7[%c0_11, %c0_12] : memref<2x256xf32, #tpu.memory_space<vmem>>, vector<2x256xf32>
      tpu.vector_store %arg7[%c0_11, %c0_12], %14 {strides = array<i32>} : memref<2x256xf32, #tpu.memory_space<vmem>>, vector<2x256xf32>,
    } else {
    }
    %c0 = arith.constant 0 : index
    %c0_1 = arith.constant 0 : index
    %3 = vector.load %arg7[%c0, %c0_1] : memref<2x256xf32, #tpu.memory_space<vmem>>, vector<2x256xf32>
    %c0_2 = arith.constant 0 : index
    %c0_3 = arith.constant 0 : index
    %4 = vector.load %arg2[%c0_2, %c0_3] : memref<2x4096xbf16, #tpu.memory_space<vmem>>, vector<2x4096xbf16>
    %c0_4 = arith.constant 0 : index
    %c0_5 = arith.constant 0 : index
    %5 = vector.load %arg3[%c0_4, %c0_5] : memref<4096x256xbf16, #tpu.memory_space<vmem>>, vector<4096x256xbf16>
    %cst = arith.constant dense<0.000000e+00> : vector<2x256xf32>
    %6 = tpu.matmul %4, %5, %cst {dimension_numbers = #tpu.dot_dimension_numbers<[1], [0], [0], [1], [0, 0, 1, 1], [], []>} : vector<2x4096xbf16>, vector<4096x256xbf16>, vector<2x256xf32> -> vector<2x256xf32>
    %7 = arith.addf %3, %6 : vector<2x256xf32>
    %c0_6 = arith.constant 0 : index
    %c0_7 = arith.constant 0 : index
    %8 = vector.load %arg7[%c0_6, %c0_7] : memref<2x256xf32, #tpu.memory_space<vmem>>, vector<2x256xf32>
    tpu.vector_store %arg7[%c0_6, %c0_7], %7 {strides = array<i32>} : memref<2x256xf32, #tpu.memory_space<vmem>>, vector<2x256xf32>,
    %c3_i32 = arith.constant 3 : i32
    %9 = arith.cmpi eq, %arg1, %c3_i32 : i32
    %10 = arith.extui %9 : i1 to i32
    %c0_i32_8 = arith.constant 0 : i32
    %11 = arith.cmpi ne, %10, %c0_i32_8 : i32
    scf.if %11 {
      %c0_9 = arith.constant 0 : index
      %c0_10 = arith.constant 0 : index
      %12 = vector.load %arg7[%c0_9, %c0_10] : memref<2x256xf32, #tpu.memory_space<vmem>>, vector<2x256xf32>
      %cst_11 = arith.constant 0.000000e+00 : f32
      %13 = vector.broadcast %cst_11 : f32 to vector<2x256xf32>
      %14 = arith.maximumf %12, %13 : vector<2x256xf32>
      %c0_12 = arith.constant 0 : index
      %c0_13 = arith.constant 0 : index
      %15 = vector.load %arg5[%c0_12, %c0_13] : memref<256x128xf32, #tpu.memory_space<vmem>>, vector<256x128xf32>
      %cst_14 = arith.constant dense<0.000000e+00> : vector<2x128xf32>
      %16 = tpu.matmul %14, %15, %cst_14 {dimension_numbers = #tpu.dot_dimension_numbers<[1], [0], [0], [1], [0, 0, 1, 1], [], []>} : vector<2x256xf32>, vector<256x128xf32>, vector<2x128xf32> -> vector<2x128xf32>
      %c0_15 = arith.constant 0 : index
      %c0_16 = arith.constant 0 : index
      %c0_17 = arith.constant 0 : index
      %17 = vector.load %arg6[%c0_15, %c0_16, %c0_17] : memref<1x2x128xf32, #tpu.memory_space<vmem>>, vector<1x2x128xf32>
      %18 = vector.shape_cast %17 : vector<1x2x128xf32> to vector<2x128xf32>
      %19 = vector.shape_cast %16 : vector<2x128xf32> to vector<1x2x128xf32>
      tpu.vector_store %arg6[%c0_15, %c0_16, %c0_17], %19 {strides = array<i32>} : memref<1x2x128xf32, #tpu.memory_space<vmem>>, vector<1x2x128xf32>,
    } else {
    }
    return
  }
  func.func @transform_0(%arg0: i32, %arg1: i32) -> (i32, i32) {
    %c0_i32 = arith.constant 0 : i32
    %c0_i32_0 = arith.constant 0 : i32
    return %c0_i32, %arg1 : i32, i32
  }
  func.func @transform_1(%arg0: i32, %arg1: i32) -> (i32, i32) {
    %c0_i32 = arith.constant 0 : i32
    return %arg1, %arg0 : i32, i32
  }
  func.func @transform_2(%arg0: i32, %arg1: i32) -> (i32, i32) {
    %c0_i32 = arith.constant 0 : i32
    %c0_i32_0 = arith.constant 0 : i32
    return %c0_i32, %arg0 : i32, i32
  }
  func.func @transform_3(%arg0: i32, %arg1: i32) -> (i32, i32) {
    %c0_i32 = arith.constant 0 : i32
    %c0_i32_0 = arith.constant 0 : i32
    return %arg0, %c0_i32 : i32, i32
  }
  func.func @transform_4(%arg0: i32, %arg1: i32) -> (i32, i32, i32) {
    %c0_i32 = arith.constant 0 : i32
    %c0_i32_0 = arith.constant 0 : i32
    %c0_i32_1 = arith.constant 0 : i32
    return %arg0, %c0_i32, %c0_i32_0 : i32, i32, i32
  }
}

</mosaic_0001>

<bundles_post_ra>
// kernel: _lambda_.1
= control target key start
LH: loop header
LB: loop body
LE: loop exit
PB: predicated region body
PF: predicated region fallthrough
CT: control target
= control target key end

     0   :  { %s7148_s0 = inlined_call_operand.vmem [shape: bf16[2,16384], index: 0, kind: input, shape index: {}]   ;;  %s7149_s1 = inlined_call_operand.hbm [shape: bf16[16384,512], index: 1, kind: input, shape index: {}]   ;;  %s7150_s2 = inlined_call_operand.hbm [shape: f32[1,512], index: 2, kind: input, shape index: {}]   ;;  %s7151_s3 = inlined_call_operand.hbm [shape: f32[512,128], index: 3, kind: input, shape index: {}]   ;;  %s7152_s4 = inlined_call_operand.vmem [shape: f32[2,2,128], index: 4, kind: output, shape index: {}]  }
   0x1   :  { %7159 = sst [smem:[#allocation17_spill]] %s7148_s0 }
   0x2   :  { %7160 = sst [smem:[#allocation18_spill]] %s7150_s2 }
   0x3   :  { %7161 = sst [smem:[#allocation19_spill]] %s7152_s4 }
   0x4   :  { %9 = vsyncpa [#allocation4], 0 }
   0x5   :  { %11 = vsyncpa [#allocation4 + $0x1], 0 }
   0x6   :  { %12 = vsyncpa [#allocation6], 0 }
   0x7   :  { %14 = vsyncpa [#allocation6 + $0x1], 0  ;;  %s6255_s15 = smov 0   ;;  %s6257_s16 = smov 0  }
   0x8   :  { %s6259_s17 = smov 0   ;;  %s6261_s18 = smov 0  }
   0x9   :  { %s6263_s19 = smov 0   ;;  %s6265_s20 = smov 0  }
   0xa   :  { %s6267_s21 = smov 0   ;;  %s6269_s22 = smov 0  }
   0xb   :  { %s6271_s23 = smov 0   ;;  %s6273_s24 = smov 0  }
   0xc   :  { %s6275_s25 = smov 0  }
   0xd LB: > { %7162 = sst [smem:[#allocation10_spill]] %s6188_s17  ;;  %s7153_s26 = sadd.s32 4294967295, %s6220_s25   ;;  %s6220_s25 = sphi %s6275_s25, %s20_s25   ;;  %s6216_s24 = sphi %s6273_s24, %s7194_s24   ;;  %s6212_s23 = sphi %s6271_s23, %s7186_s23   ;;  %s6208_s22 = sphi %s6269_s22, %s7193_s22   ;;  %s6204_s21 = sphi %s6267_s21, %s7192_s21   ;;  %s6200_s20 = sphi %s6265_s20, %s7184_s20   ;;  %s6196_s19 = sphi %s6263_s19, %s7191_s19   ;;  %s6192_s18 = sphi %s6261_s18, %s7190_s18   ;;  %s6188_s17 = sphi %s6259_s17, %s7182_s17   ;;  %s6184_s16 = sphi %s6257_s16, %s7189_s16   ;;  %s6180_s15 = sphi %s6255_s15, %s7188_s15  }
   0xe   : > { %7163 = sst [smem:[#allocation11_spill]] %s6200_s20  ;;  %s29_s27 = sadd.s32 1, %s6212_s23 }
   0xf   : > { %7164 = sst [smem:[#allocation12_spill]] %s6212_s23  ;;  %p30_p0 = scmp.ge.s32.totalorder %s29_s27, 4 }
  0x10   : > { %s32_s28 = sadd.s32 1, %s6216_s24  ;;  %s67_s29 = sadd.s32 1, %s6200_s20 }
  0x11   : > { %p74_p1 = scmp.ne.s32.totalorder %s6200_s20, %s6196_s19  ;;  %s7196_s27 = smov (%p30_p0, %s29_s27), 0 }
  0x12   : > { %7165 = sst [smem:[#allocation13_spill]] %s7196_s27  ;;  %s7198_s28 = smov (!%p30_p0, %s32_s28), %s6216_s24 }
  0x13   : > { %s62_s30 = ssub.s32 %s6212_s23, %s7196_s27  ;;  %p75_p2 = scmp.eq.s32.totalorder %s6220_s25, 0 }
  0x14   : > { %p34_p3 = scmp.ge.s32.totalorder %s7198_s28, 2  ;;  %p80_p4 = scmp.ne.s32.totalorder %s6196_s19, %s6192_s18 }
  0x15   : > { %p6323_p5 = por %p75_p2, %p74_p1  ;;  %p6329_p6 = scmp.eq.s32.totalorder %s7153_s26, 0 }
  0x16   : > { %s7200_s28 = smov (%p34_p3, %s7198_s28), 0  ;;  %s93_s8 = sadd.s32 1, %s6188_s17 }
  0x17   : > { %7168 = sst [smem:[#allocation14_spill]] %s7200_s28  ;;  %p6337_p7 = por %p6329_p6, %p80_p4 }
  0x18   : > { %s63_s9 = ssub.s32 %s6216_s24, %s7200_s28  ;;  %p100_p8 = scmp.ne.s32.totalorder %s6188_s17, %s6184_s16 }
  0x19   : > { %s64_s10 = sor.u32 %s63_s9, %s62_s30  ;;  %p91_p9 = scmp.eq.s32.totalorder %s63_s9, 0 }
  0x1a   : > { %p65_p10 = scmp.eq.s32.totalorder %s64_s10, 0  ;;  %p6348_p11 = por %p100_p8, %p75_p2 }
  0x1b   : > { %s6353_s12 = scalar_select %p91_p9, %s6188_s17, %s93_s8  }
  0x1c   : > { %s6356_s13 = scalar_select %p65_p10, %s6200_s20, %s67_s29  }
  0x1d   : > { %7171 = sst [smem:[#allocation15_spill]] %s6353_s12  ;;  %p106_p12 = scmp.ne.s32.totalorder %s6184_s16, %s6180_s15 }
  0x1e   : > { %7172 = sst [smem:[#allocation16_spill]] %s6356_s13  ;;  %p5176_p13 = scmp.lt.s32.totalorder %s6220_s25, 8 }
  0x1f   : > { %s214_s14 = sand.u32 1, %s6220_s25   ;;  %p6364_p0 = por %p106_p12, %p6329_p6 }
  0x20   : > { %p6370_p1 = pnand %p5176_p13, %p6323_p5  ;;  %s216_s9 = sand.u32 1, %s6188_s17  }
  0x21   : > { %s4593_s10 = sshll.u32 %s216_s9, 1  ;;  %s5123_s8 = sshll.u32 %s6216_s24, 5 }
  0x22   : > { %s7175_s2 = sld [smem:[#allocation18_spill]]  ;;  %s218_s15 = scalar_lea.vmem [#allocation5], %s4593_s10 }
  0x23   : > { %s226_s27 = sshll.u32 %s218_s15, 4  ;;  %p6381_p2 = pnand %p5176_p13, %p6348_p11  ;;  %s227_s27 = int_to_ptr.vmem [resolvable:$true] %s226_s27 }
  0x24   : > { %s4596_s5 = sshll.u32 %s216_s9, 8  ;;  %p4599_p3 = scmp.ge.s32.totalorder %s6220_s25, 1 }
  0x25   : > { %s6386_s13 = scalar_lea.sflag [#allocation6], %s214_s14  ;;  %p6044_p4 = pneg %p6381_p2 }
  0x26   : > { %s6055_s12 = scalar_lea.vmem %s227_s27, 32  ;;  %s6222_s26 = smov [#allocation5]  }
  0x27   : > { %p6056_p5 = scmp.ne.s32.totalorder %s227_s27, %s6055_s12  ;;  %s6060_s28 = sshll.u32 %s6222_s26, 4  ;;  %s6061_s28 = int_to_ptr.vmem [resolvable:$false] %s6060_s28 }
  0x28   : > { %s224_s29 = scalar_lea.hbm %s7175_s2, %s5123_s8  ;;  %s6062_s11 = scalar_lea.vmem %s6061_s28, 64 }
  0x29   : > { %p6058_p6 = pnand %p6056_p5, %p6044_p4  ;;  %p6063_p9 = scmp.lt.s32.totalorder %s227_s27, %s6061_s28 }
  0x2a   : > { %p6064_p10 = scmp.lt.s32.totalorder %s6062_s11, %s6055_s12 }
  0x2b   : > { %p6059_p8 = pneg %p6058_p6 }
  0x2c   : > { %p6065_p11 = por %p6064_p10, %p6063_p9 }
  0x2e   : > { %p6066_p12 = pnand %p6065_p11, %p6059_p8 }
  0x30   : > { %6069 = shalt.err (!%p6066_p12)
}
  0x31   : > { %5172 = dma.hbm_to_vmem [thread:$0]  (!%p6381_p2), %s224_s29, 32, %s227_s27, %s6386_s13  }
  0x32   : > { %s237_s14 = scalar_lea.vmem [#allocation7], %s4596_s5  ;;  %p252_p13 = scmp.lt.s32.totalorder %s6220_s25, 9 }
  0x33   : > { %s244_s9 = sshll.u32 %s237_s14, 4  ;;  %s190_s10 = sand.u32 1, %s6200_s20   ;;  %s6397_s9 = int_to_ptr.vmem [resolvable:$true] %s244_s9 }
  0x34   : > { %p6401_p5 = pnand %p4599_p3, %p252_p13  ;;  %s4590_s8 = sshll.u32 %s6216_s24, 1 }
  0x35   : > { %s4588_s15 = sshll.u32 %s190_s10, 12  ;;  %s5122_s26 = sshll.u32 %s6212_s23, 11 }
  0x36   : > { %s201_s28 = sadd.s32 %s5122_s26, %s4590_s8  ;;  %s194_s11 = scalar_lea.vmem [#allocation3], %s4588_s15 }
  0x37   : > { %s204_s2 = sshll.u32 %s194_s11, 4  ;;  %s4592_s17 = sshll.u32 %s201_s28, 6  ;;  %s205_s2 = int_to_ptr.vmem [resolvable:$true] %s204_s2 }
  0x38   : > { %s203_s5 = scalar_lea.hbm %s7149_s1, %s4592_s17  ;;  %s191_s14 = scalar_lea.sflag [#allocation4], %s190_s10 }
  0x39   : > { %p6072_p6 = pneg %p6370_p1  ;;  %s6083_s4 = scalar_lea.vmem %s205_s2, 65536 }
  0x3a   : > { %p6084_p3 = scmp.ne.s32.totalorder %s205_s2, %s6083_s4  ;;  %s6223_s20 = smov [#allocation3]  }
  0x3b   : > { %s6088_s0 = sshll.u32 %s6223_s20, 4  ;;  %s6089_s0 = int_to_ptr.vmem [resolvable:$false] %s6088_s0 }
  0x3c   : > { %p6086_p8 = pnand %p6084_p3, %p6072_p6  ;;  %s6090_s23 = scalar_lea.vmem %s6089_s0, 131072 }
  0x3d   : > { %p6091_p10 = scmp.lt.s32.totalorder %s205_s2, %s6089_s0  ;;  %p6092_p11 = scmp.lt.s32.totalorder %s6090_s23, %s6083_s4 }
  0x3e   : > { %p6087_p9 = pneg %p6086_p8 }
  0x3f   : > { %p6093_p12 = por %p6092_p11, %p6091_p10 }
  0x41   : > { %p6094_p13 = pnand %p6093_p12, %p6087_p9 }
  0x43   : > { %6097 = shalt.err (!%p6094_p13)
}
  0x44   : > { %s6224_s8 = smov 256   ;;  %s6225_s17 = smov 128  }
  0x45   : > { %s6226_s10 = smov 8   ;;  %s5124_s15 = sshll.u32 %s6216_s24, 12 }
  0x46   : > { %5169 = dma.hbm_to_vmem [thread:$0]  (!%p6370_p1), %s203_s5, 65536, %s205_s2, %s191_s14, %s6224_s8, %s6225_s17, %s6226_s10  }
  0x47   : > { %s243_s0 = scalar_lea.hbm %s7151_s3, %s5124_s15  ;;  %s6111_s4 = scalar_lea.vmem %s6397_s9, 4096 }
  0x48   : > { %p6112_p6 = scmp.ne.s32.totalorder %s6397_s9, %s6111_s4  ;;  %s6227_s23 = smov [#allocation7]  }
  0x49   : > { %s6116_s28 = sshll.u32 %s6227_s23, 4  ;;  %s6117_s28 = int_to_ptr.vmem [resolvable:$false] %s6116_s28 }
  0x4a   : > { %p6114_p3 = pnand %p6112_p6, %p6044_p4  ;;  %s6118_s11 = scalar_lea.vmem %s6117_s28, 8192 }
  0x4b   : > { %p6119_p9 = scmp.lt.s32.totalorder %s6397_s9, %s6117_s28  ;;  %p6120_p10 = scmp.lt.s32.totalorder %s6118_s11, %s6111_s4 }
  0x4c   : > { %p6115_p8 = pneg %p6114_p3 }
  0x4d   : > { %p6121_p11 = por %p6120_p10, %p6119_p9 }
  0x4f   : > { %p6122_p12 = pnand %p6121_p11, %p6115_p8 }
  0x51   : > { %6125 = shalt.err (!%p6122_p12)
}
  0x52   : > { %5175 = dma.hbm_to_vmem [thread:$0]  (!%p6381_p2), %s243_s0, 4096, %s6397_s9, %s6386_s13, %s6225_s17, %s6225_s17, %s6226_s10  }
  0x53   : > { %256 = sbr.rel (%p6401_p5) target bundleno = 1066 (0x42a), region = 36  ;;  %s258_s2 = sand.u32 (!%p6401_p5), 1, %s6196_s19  }
  0x54   : > { %s4600_s30 = sshll.u32 (!%p6401_p5), %s258_s2, 12  ;;  %s259_s27 = scalar_lea.sflag (!%p6401_p5), [#allocation4], %s258_s2 }
  0x55   : > { %s6432_s29 = scalar_lea.vmem (!%p6401_p5), [#allocation3], %s4600_s30 }
  0x58   : > { %6171 = dma.done.wait (%p6337_p7), %s259_s27, 65536  }
  0x59   : > { %6173 = vsyncadd (%p6337_p7), %s259_s27, 4294901760  ;;  %s7178_s6 = sadd.s32 4294967295, %s6220_s25   ;;  %s269_s9 = sand.u32 1, %s6184_s16  }
  0x5a   : > { %s267_s13 = sand.u32 1, %s7178_s6   ;;  %s4601_s12 = sshll.u32 %s269_s9, 1 }
  0x5b   : > { %s268_s5 = scalar_lea.sflag [#allocation6], %s267_s13  ;;  %s271_s14 = scalar_lea.vmem [#allocation5], %s4601_s12 }
  0x5c   : > { %6175 = dma.done.wait (%p6364_p0), %s268_s5, 4128  }
  0x5d   : > { %6177 = vsyncadd (%p6364_p0), %s268_s5, 4294963168  ;;  %s4602_s8 = sshll.u32 %s269_s9, 8  ;;  %s4603_s7 = sshll.u32 %s6204_s21, 5 }
  0x5e   : > { %p319_p7 = scmp.lt.s32.totalorder %s4603_s7, 127  ;;  %p327_p1 = scmp.lt.s32.totalorder %s6208_s22, 1 }
  0x5f   : > { %s7179_s15 = sld [smem:[#allocation17_spill]]  ;;  %s6458_s28 = scalar_lea.vmem [#allocation7], %s4602_s8 }
  0x60   : > { %s7202_s7 = smov (!%p319_p7, %s4603_s7), 127  ;;  %s7204_s22 = smov (!%p327_p1, %s6208_s22), 1 }
  0x61   : > { %s4604_s26 = sshll.u32 %s7204_s22, 1  ;;  %s7180_s23 = sld [smem:[#allocation19_spill]] }
  0x62   : > { %p4605_p0 = scmp.ne.s32.totalorder %s6204_s21, 0 }
  0x64   : > { %334 = sbr.rel (%p4605_p0) target bundleno = 116 (0x74), region = 52 }
  0x65   : > { %s6451_s20 = scalar_lea.vmem %s7179_s15, %s7202_s7 }
  0x67   : > { %s6456_s18 = scalar_lea.vmem %s7180_s23, %s4604_s26 }
  0x69   : > { %v337_v0 = vlaneseq  ;;  %v335_v2 = vld [vmem:[%s271_s14] sm:$0x3] }
  0x6b   : > { %v338_v1 = vshrl.u32 %v337_v0, 7 }
  0x6d   : > { %v339_v3 = vsub.s32 0, %v338_v1  ;;  %v343_v4 = vsub.s32 1, %v338_v1 }
  0x6f   : > { %v340_v5 = vrot.slane %v335_v2, %v339_v3  ;;  %v344_v6 = vrot.slane %v335_v2, %v343_v4 }
  0x71   : > { %v345_v7 = vcombine.low %v340_v5, %v344_v6 }
  0x73   : > { %4606 = vst.sshfl [vmem:[#allocation2] sm:$0x33 pattern:$0x76325410] %v345_v7 }
  0x74 PF: > { %v5270_v8 = vld [vmem:[%s6432_s29 + $0x74] ss:$8 sps:$4 sm:$0xff]   ;;  %v5274_v10 = vld [vmem:[%s6432_s29 + $0x70] ss:$8 sps:$4 sm:$0xff]   ;;  %v5276_v12 = vld [vmem:[%s6432_s29 + $0x64] ss:$8 sps:$4 sm:$0xff]   ;;  %v880_v46 = vlaneseq }
  0x75   : > { %v5272_v9 = vld [vmem:[%s6432_s29 + $0x174] ss:$8 sps:$4 sm:$0xff]   ;;  %3664 = vmatprep.subr.bf16.mxu0 %v5270_v8  ;;  %v5275_v11 = vld [vmem:[%s6432_s29 + $0x170] ss:$8 sps:$4 sm:$0xff]   ;;  %v5278_v13 = vld [vmem:[%s6432_s29 + $0x164] ss:$8 sps:$4 sm:$0xff]  }
  0x76   : > { %3705 = vmatprep.subr.bf16.mxu1 %v5272_v9  ;;  %3665 = vmatpush1.bf16.msra.mxu0 %v5274_v10  ;;  %v5280_v14 = vld [vmem:[%s6432_s29 + $0x60] ss:$8 sps:$4 sm:$0xff]   ;;  %v5282_v16 = vld [vmem:[%s6432_s29 + $0x54] ss:$8 sps:$4 sm:$0xff]   ;;  %v5286_v18 = vld [vmem:[%s6432_s29 + $0x50] ss:$8 sps:$4 sm:$0xff]  }
  0x77   : > { %3706 = vmatpush1.bf16.msra.mxu1 %v5275_v11  ;;  %3666 = vmatprep.subr.bf16.mxu0 %v5276_v12  ;;  %v5281_v15 = vld [vmem:[%s6432_s29 + $0x160] ss:$8 sps:$4 sm:$0xff]   ;;  %v5284_v17 = vld [vmem:[%s6432_s29 + $0x154] ss:$8 sps:$4 sm:$0xff]   ;;  %v5287_v19 = vld [vmem:[%s6432_s29 + $0x150] ss:$8 sps:$4 sm:$0xff]  }
  0x78   : > { %3707 = vmatprep.subr.bf16.mxu1 %v5278_v13  ;;  %v5288_v20 = vld [vmem:[%s6432_s29 + $0x44] ss:$8 sps:$4 sm:$0xff]   ;;  %v5292_v22 = vld [vmem:[%s6432_s29 + $0x40] ss:$8 sps:$4 sm:$0xff]   ;;  %v5294_v24 = vld [vmem:[%s6432_s29 + $0x34] ss:$8 sps:$4 sm:$0xff]  }
  0x79   : > { %v5290_v21 = vld [vmem:[%s6432_s29 + $0x144] ss:$8 sps:$4 sm:$0xff]   ;;  %v5293_v23 = vld [vmem:[%s6432_s29 + $0x140] ss:$8 sps:$4 sm:$0xff]   ;;  %v5296_v25 = vld [vmem:[%s6432_s29 + $0x134] ss:$8 sps:$4 sm:$0xff]  }
  0x7a   : > { %3667 = vmatpush1.bf16.msra.mxu0 %v5280_v14  ;;  %v5298_v26 = vld [vmem:[%s6432_s29 + $0x30] ss:$8 sps:$4 sm:$0xff]   ;;  %v5300_v28 = vld [vmem:[%s6432_s29 + $0x24] ss:$8 sps:$4 sm:$0xff]   ;;  %v5304_v30 = vld [vmem:[%s6432_s29 + $0x20] ss:$8 sps:$4 sm:$0xff]  }
  0x7b   : > { %3708 = vmatpush1.bf16.msra.mxu1 %v5281_v15  ;;  %3668 = vmatprep.subr.bf16.mxu0 %v5282_v16  ;;  %v5299_v27 = vld [vmem:[%s6432_s29 + $0x130] ss:$8 sps:$4 sm:$0xff]   ;;  %v5302_v29 = vld [vmem:[%s6432_s29 + $0x124] ss:$8 sps:$4 sm:$0xff]   ;;  %v5305_v31 = vld [vmem:[%s6432_s29 + $0x120] ss:$8 sps:$4 sm:$0xff]  }
  0x7c   : > { %3709 = vmatprep.subr.bf16.mxu1 %v5284_v17  ;;  %v5306_v32 = vld [vmem:[%s6432_s29 + $0x14] ss:$8 sps:$4 sm:$0xff]   ;;  %v5310_v34 = vld [vmem:[%s6432_s29 + $0x10] ss:$8 sps:$4 sm:$0xff]   ;;  %v5312_v36 = vld [vmem:[%s6432_s29 + $0x4] ss:$8 sps:$4 sm:$0xff]  }
  0x7d   : > { %v5308_v33 = vld [vmem:[%s6432_s29 + $0x114] ss:$8 sps:$4 sm:$0xff]   ;;  %v5311_v35 = vld [vmem:[%s6432_s29 + $0x110] ss:$8 sps:$4 sm:$0xff]   ;;  %v5314_v37 = vld [vmem:[%s6432_s29 + $0x104] ss:$8 sps:$4 sm:$0xff]  }
  0x7e   : > { %3669 = vmatpush1.bf16.msra.mxu0 %v5286_v18  ;;  %v5316_v38 = vld [vmem:[%s6432_s29] ss:$8 sps:$4 sm:$0xff]   ;;  %v5318_v40 = vld [vmem:[%s6432_s29 + $0xf4] ss:$8 sps:$4 sm:$0xff]   ;;  %v5322_v42 = vld [vmem:[%s6432_s29 + $0xf0] ss:$8 sps:$4 sm:$0xff]  }
  0x7f   : > { %3710 = vmatpush1.bf16.msra.mxu1 %v5287_v19  ;;  %3670 = vmatprep.subr.bf16.mxu0 %v5288_v20  ;;  %v5317_v39 = vld [vmem:[%s6432_s29 + $0x100] ss:$8 sps:$4 sm:$0xff]   ;;  %v5320_v41 = vld [vmem:[%s6432_s29 + $0x1f4] ss:$8 sps:$4 sm:$0xff]   ;;  %v5323_v43 = vld [vmem:[%s6432_s29 + $0x1f0] ss:$8 sps:$4 sm:$0xff]  }
  0x80   : > { %3711 = vmatprep.subr.bf16.mxu1 %v5290_v21  ;;  %v6228_v44 = vmov 1966171168   ;;  %v5324_v47 = vld [vmem:[%s6432_s29 + $0xe4] ss:$8 sps:$4 sm:$0xff]   ;;  %v5328_v49 = vld [vmem:[%s6432_s29 + $0xe0] ss:$8 sps:$4 sm:$0xff]  }
  0x81   : > { %v878_v45 = vunpack.c.l.s4 %v6228_v44  ;;  %v5326_v48 = vld [vmem:[%s6432_s29 + $0x1e4] ss:$8 sps:$4 sm:$0xff]   ;;  %v6500_v51 = vshrl.u32 %v880_v46, 7  ;;  %v5329_v52 = vld [vmem:[%s6432_s29 + $0x1e0] ss:$8 sps:$4 sm:$0xff]   ;;  %p5119_p2 = scmp.ne.s32.totalorder %s6204_s21, 3 }
  0x82   : > { %3671 = vmatpush1.bf16.msra.mxu0 %v5292_v22  ;;  %v5330_v53 = vld [vmem:[%s6432_s29 + $0xd4] ss:$8 sps:$4 sm:$0xff]   ;;  %v5334_v55 = vld [vmem:[%s6432_s29 + $0xd0] ss:$8 sps:$4 sm:$0xff]   ;;  %v5336_v58 = vld [vmem:[%s6432_s29 + $0xc4] ss:$8 sps:$4 sm:$0xff]  }
  0x83   : > { %3712 = vmatpush1.bf16.msra.mxu1 %v5293_v23  ;;  %3672 = vmatprep.subr.bf16.mxu0 %v5294_v24  ;;  %v879_v50 = vunpack.c.0.s8 %v878_v45  ;;  %v5332_v54 = vld [vmem:[%s6432_s29 + $0x1d4] ss:$8 sps:$4 sm:$0xff]   ;;  %v5335_v56 = vld [vmem:[%s6432_s29 + $0x1d0] ss:$8 sps:$4 sm:$0xff]   ;;  %v5338_v59 = vld [vmem:[%s6432_s29 + $0x1c4] ss:$8 sps:$4 sm:$0xff]  }
  0x84   : > { %3713 = vmatprep.subr.bf16.mxu1 %v5296_v25  ;;  %v356_v60 = vld [vmem:[%s6451_s20] sm:$0xff]  ;;  %v5346_v3 = vld [vmem:[%s6432_s29 + $0xb0] ss:$8 sps:$4 sm:$0xff]   ;;  %v5348_v6 = vld [vmem:[%s6432_s29 + $0xa4] ss:$8 sps:$4 sm:$0xff]  }
  0x85   : > { %v6508_v57 = vsub.s32 %v879_v50, %v6500_v51  ;;  %v5340_v61 = vld [vmem:[%s6432_s29 + $0xc0] ss:$8 sps:$4 sm:$0xff]   ;;  %v5342_v0 = vld [vmem:[%s6432_s29 + $0xb4] ss:$8 sps:$4 sm:$0xff]   ;;  %v5347_v5 = vld [vmem:[%s6432_s29 + $0x1b0] ss:$8 sps:$4 sm:$0xff]   ;;  %v876_v9 = vcombine.high %v356_v60, %v356_v60 }
  0x86   : > { %3673 = vmatpush1.bf16.msra.mxu0 %v5298_v26  ;;  %v5341_v63 = vld [vmem:[%s6432_s29 + $0x1c0] ss:$8 sps:$4 sm:$0xff]   ;;  %v5344_v1 = vld [vmem:[%s6432_s29 + $0x1b4] ss:$8 sps:$4 sm:$0xff]   ;;  %v5350_v7 = vld [vmem:[%s6432_s29 + $0x1a4] ss:$8 sps:$4 sm:$0xff]  }
  0x87   : > { %3714 = vmatpush1.bf16.msra.mxu1 %v5299_v27  ;;  %3674 = vmatprep.subr.bf16.mxu0 %v5300_v28  ;;  %v883_v62 = vrot.slane %v356_v60, %v6508_v57  ;;  %v5352_v10 = vld [vmem:[%s6432_s29 + $0xa0] ss:$8 sps:$4 sm:$0xff]   ;;  %v5354_v12 = vld [vmem:[%s6432_s29 + $0x94] ss:$8 sps:$4 sm:$0xff]   ;;  %v6528_v14 = vrot.slane %v876_v9, %v6508_v57  ;;  %v5358_v15 = vld [vmem:[%s6432_s29 + $0x90] ss:$8 sps:$4 sm:$0xff]  }
  0x88   : > { %3715 = vmatprep.subr.bf16.mxu1 %v5302_v29  ;;  %v5353_v11 = vld [vmem:[%s6432_s29 + $0x1a0] ss:$8 sps:$4 sm:$0xff]   ;;  %v5356_v13 = vld [vmem:[%s6432_s29 + $0x194] ss:$8 sps:$4 sm:$0xff]   ;;  %v5359_v16 = vld [vmem:[%s6432_s29 + $0x190] ss:$8 sps:$4 sm:$0xff]  }
  0x89   : > { %v891_v2 = vcombine.high %v883_v62, %v883_v62  ;;  %v5360_v17 = vld [vmem:[%s6432_s29 + $0x84] ss:$8 sps:$4 sm:$0xff]   ;;  %v892_v19 = vcombine.high %v6528_v14, %v6528_v14  ;;  %v5364_v20 = vld [vmem:[%s6432_s29 + $0x80] ss:$8 sps:$4 sm:$0xff]   ;;  %v899_v21 = vrot.slane %v883_v62, %v6508_v57  ;;  %v5369_v23 = vld [vmem:[%s6432_s29 + $0x274] ss:$8 sps:$4 sm:$0xff]  }
  0x8a   : > { %3675 = vmatpush1.bf16.msra.mxu0 %v5304_v30  ;;  %v5362_v18 = vld [vmem:[%s6432_s29 + $0x184] ss:$8 sps:$4 sm:$0xff]   ;;  %v5365_v22 = vld [vmem:[%s6432_s29 + $0x180] ss:$8 sps:$4 sm:$0xff]   ;;  %v5372_v24 = vld [vmem:[%s6432_s29 + $0x374] ss:$8 sps:$4 sm:$0xff]  }
  0x8b   : > { %3716 = vmatpush1.bf16.msra.mxu1 %v5305_v31  ;;  %3676 = vmatprep.subr.bf16.mxu0 %v5306_v32  ;;  %v913_v4 = vrot.slane %v891_v2, %v6508_v57  ;;  %v920_v25 = vrot.slane %v892_v19, %v6508_v57  ;;  %v921_v26 = vcombine.high %v899_v21, %v899_v21  ;;  %v5367_v27 = vld [vmem:[%s6432_s29 + $0x270] ss:$8 sps:$4 sm:$0xff]   ;;  %v5375_v29 = vld [vmem:[%s6432_s29 + $0x264] ss:$8 sps:$4 sm:$0xff]   ;;  %v5373_v32 = vld [vmem:[%s6432_s29 + $0x260] ss:$8 sps:$4 sm:$0xff]  }
  0x8c   : > { %3717 = vmatprep.subr.bf16.mxu1 %v5308_v33  ;;  %v5370_v28 = vld [vmem:[%s6432_s29 + $0x370] ss:$8 sps:$4 sm:$0xff]   ;;  %v5378_v30 = vld [vmem:[%s6432_s29 + $0x364] ss:$8 sps:$4 sm:$0xff]   ;;  %v5376_v33 = vld [vmem:[%s6432_s29 + $0x360] ss:$8 sps:$4 sm:$0xff]  }
  0x8d   : > { %v923_v8 = vcombine.high %v913_v4, %v913_v4  ;;  %3696 = vmatprep.mubr.bf16.mxu0 %v913_v4  ;;  %v924_v31 = vcombine.high %v920_v25, %v920_v25  ;;  %v5391_v44 = vld [vmem:[%s6432_s29 + $0x230] ss:$8 sps:$4 sm:$0xff]   ;;  %v5399_v46 = vld [vmem:[%s6432_s29 + $0x224] ss:$8 sps:$4 sm:$0xff]   ;;  %v5405_v50 = vld [vmem:[%s6432_s29 + $0x214] ss:$8 sps:$4 sm:$0xff]  }
  0x8e   : > { %3677 = vmatpush1.bf16.msra.mxu0 %v5310_v34  ;;  %v5381_v34 = vld [vmem:[%s6432_s29 + $0x254] ss:$8 sps:$4 sm:$0xff]   ;;  %v5394_v45 = vld [vmem:[%s6432_s29 + $0x330] ss:$8 sps:$4 sm:$0xff]   ;;  %v5421_v2 = vld [vmem:[%s6432_s29 + $0x2e0] ss:$8 sps:$4 sm:$0xff]  }
  0x8f   : > { %3718 = vmatpush1.bf16.msra.mxu1 %v5311_v35  ;;  %3678 = vmatprep.subr.bf16.mxu0 %v5312_v36  ;;  %v5384_v35 = vld [vmem:[%s6432_s29 + $0x354] ss:$8 sps:$4 sm:$0xff]   ;;  %v5379_v36 = vld [vmem:[%s6432_s29 + $0x250] ss:$8 sps:$4 sm:$0xff]   ;;  %v5438_v9 = vld [vmem:[%s6432_s29 + $0x3c4] ss:$8 sps:$4 sm:$0xff]  }
  0x90   : > { %3719 = vmatprep.subr.bf16.mxu1 %v5314_v37  ;;  %3737 = vmatprep.mubr.bf16.mxu1 %v923_v8  ;;  %v5382_v37 = vld [vmem:[%s6432_s29 + $0x350] ss:$8 sps:$4 sm:$0xff]   ;;  %v5417_v60 = vld [vmem:[%s6432_s29 + $0x2f4] ss:$8 sps:$4 sm:$0xff]   ;;  %v5435_v8 = vld [vmem:[%s6432_s29 + $0x2c4] ss:$8 sps:$4 sm:$0xff]  }
  0x91   : > { %v5415_v62 = vld [vmem:[%s6432_s29 + $0x2f0] ss:$8 sps:$4 sm:$0xff]   ;;  %v5429_v4 = vld [vmem:[%s6432_s29 + $0x2d4] ss:$8 sps:$4 sm:$0xff]   ;;  %v5445_v19 = vld [vmem:[%s6432_s29 + $0x2a0] ss:$8 sps:$4 sm:$0xff]  }
  0x92   : > { %3679 = vmatpush1.bf16.msra.mxu0 %v5316_v38  ;;  %v5387_v38 = vld [vmem:[%s6432_s29 + $0x244] ss:$8 sps:$4 sm:$0xff]  }
  0x93   : > { %3720 = vmatpush1.bf16.msra.mxu1 %v5317_v39  ;;  %3680 = vmatprep.subr.bf16.mxu0 %v5318_v40  ;;  %v5390_v39 = vld [vmem:[%s6432_s29 + $0x344] ss:$8 sps:$4 sm:$0xff]   ;;  %v5385_v40 = vld [vmem:[%s6432_s29 + $0x240] ss:$8 sps:$4 sm:$0xff]  }
  0x94   : > { %3721 = vmatprep.subr.bf16.mxu1 %v5320_v41  ;;  %v5388_v41 = vld [vmem:[%s6432_s29 + $0x340] ss:$8 sps:$4 sm:$0xff]  }
  0x96   : > { %3681 = vmatpush2.bf16.msra.mxu0 %v5322_v42  ;;  %v5393_v42 = vld [vmem:[%s6432_s29 + $0x234] ss:$8 sps:$4 sm:$0xff]  }
  0x97   : > { %3722 = vmatpush2.bf16.msra.mxu1 %v5323_v43  ;;  %3682 = vmatprep.subr.bf16.mxu0 %v5324_v47  ;;  %v5396_v43 = vld [vmem:[%s6432_s29 + $0x334] ss:$8 sps:$4 sm:$0xff]   ;;  %v5402_v47 = vld [vmem:[%s6432_s29 + $0x324] ss:$8 sps:$4 sm:$0xff]  }
  0x98   : > { %3723 = vmatprep.subr.bf16.mxu1 %v5326_v48  ;;  %v5397_v48 = vld [vmem:[%s6432_s29 + $0x220] ss:$8 sps:$4 sm:$0xff]  }
  0x9a   : > { %3683 = vmatpush2.bf16.msra.mxu0 %v5328_v49  ;;  %v5400_v49 = vld [vmem:[%s6432_s29 + $0x320] ss:$8 sps:$4 sm:$0xff]  }
  0x9b   : > { %3724 = vmatpush2.bf16.msra.mxu1 %v5329_v52  ;;  %3684 = vmatprep.subr.bf16.mxu0 %v5330_v53  ;;  %v5408_v52 = vld [vmem:[%s6432_s29 + $0x314] ss:$8 sps:$4 sm:$0xff]   ;;  %v5403_v53 = vld [vmem:[%s6432_s29 + $0x210] ss:$8 sps:$4 sm:$0xff]  }
  0x9c   : > { %3725 = vmatprep.subr.bf16.mxu1 %v5332_v54  ;;  %v5406_v54 = vld [vmem:[%s6432_s29 + $0x310] ss:$8 sps:$4 sm:$0xff]  }
  0x9e   : > { %3685 = vmatpush2.bf16.msra.mxu0 %v5334_v55  ;;  %v5411_v55 = vld [vmem:[%s6432_s29 + $0x204] ss:$8 sps:$4 sm:$0xff]  }
  0x9f   : > { %3726 = vmatpush2.bf16.msra.mxu1 %v5335_v56  ;;  %3686 = vmatprep.subr.bf16.mxu0 %v5336_v58  ;;  %v5414_v56 = vld [vmem:[%s6432_s29 + $0x304] ss:$8 sps:$4 sm:$0xff]   ;;  %v5409_v58 = vld [vmem:[%s6432_s29 + $0x200] ss:$8 sps:$4 sm:$0xff]  }
  0xa0   : > { %3727 = vmatprep.subr.bf16.mxu1 %v5338_v59  ;;  %v5412_v59 = vld [vmem:[%s6432_s29 + $0x300] ss:$8 sps:$4 sm:$0xff]  }
  0xa2   : > { %3687 = vmatpush2.bf16.msra.mxu0 %v5340_v61  ;;  %v5420_v61 = vld [vmem:[%s6432_s29 + $0x3f4] ss:$8 sps:$4 sm:$0xff]  }
  0xa3   : > { %3728 = vmatpush2.bf16.msra.mxu1 %v5341_v63  ;;  %3688 = vmatprep.subr.bf16.mxu0 %v5342_v0  ;;  %v5418_v63 = vld [vmem:[%s6432_s29 + $0x3f0] ss:$8 sps:$4 sm:$0xff]   ;;  %v5423_v0 = vld [vmem:[%s6432_s29 + $0x2e4] ss:$8 sps:$4 sm:$0xff]  }
  0xa4   : > { %3729 = vmatprep.subr.bf16.mxu1 %v5344_v1  ;;  %v5426_v1 = vld [vmem:[%s6432_s29 + $0x3e4] ss:$8 sps:$4 sm:$0xff]  }
  0xa6   : > { %3689 = vmatpush2.bf16.msra.mxu0 %v5346_v3  ;;  %v5424_v3 = vld [vmem:[%s6432_s29 + $0x3e0] ss:$8 sps:$4 sm:$0xff]  }
  0xa7   : > { %3730 = vmatpush2.bf16.msra.mxu1 %v5347_v5  ;;  %3690 = vmatprep.subr.bf16.mxu0 %v5348_v6  ;;  %v5432_v5 = vld [vmem:[%s6432_s29 + $0x3d4] ss:$8 sps:$4 sm:$0xff]   ;;  %v5427_v6 = vld [vmem:[%s6432_s29 + $0x2d0] ss:$8 sps:$4 sm:$0xff]  }
  0xa8   : > { %3731 = vmatprep.subr.bf16.mxu1 %v5350_v7  ;;  %v5430_v7 = vld [vmem:[%s6432_s29 + $0x3d0] ss:$8 sps:$4 sm:$0xff]  }
  0xaa   : > { %3691 = vmatpush2.bf16.msra.mxu0 %v5352_v10  ;;  %v5433_v10 = vld [vmem:[%s6432_s29 + $0x2c0] ss:$8 sps:$4 sm:$0xff]  }
  0xab   : > { %3732 = vmatpush2.bf16.msra.mxu1 %v5353_v11  ;;  %3692 = vmatprep.subr.bf16.mxu0 %v5354_v12  ;;  %v5436_v11 = vld [vmem:[%s6432_s29 + $0x3c0] ss:$8 sps:$4 sm:$0xff]   ;;  %v5441_v12 = vld [vmem:[%s6432_s29 + $0x2b4] ss:$8 sps:$4 sm:$0xff]  }
  0xac   : > { %3733 = vmatprep.subr.bf16.mxu1 %v5356_v13  ;;  %v5444_v13 = vld [vmem:[%s6432_s29 + $0x3b4] ss:$8 sps:$4 sm:$0xff]  }
  0xae   : > { %3693 = vmatpush2.bf16.msra.mxu0 %v5358_v15  ;;  %v5439_v15 = vld [vmem:[%s6432_s29 + $0x2b0] ss:$8 sps:$4 sm:$0xff]  }
  0xaf   : > { %3734 = vmatpush2.bf16.msra.mxu1 %v5359_v16  ;;  %3694 = vmatprep.subr.bf16.mxu0 %v5360_v17  ;;  %v5442_v16 = vld [vmem:[%s6432_s29 + $0x3b0] ss:$8 sps:$4 sm:$0xff]   ;;  %v5447_v17 = vld [vmem:[%s6432_s29 + $0x2a4] ss:$8 sps:$4 sm:$0xff]  }
  0xb0   : > { %3735 = vmatprep.subr.bf16.mxu1 %v5362_v18  ;;  %v5450_v18 = vld [vmem:[%s6432_s29 + $0x3a4] ss:$8 sps:$4 sm:$0xff]  }
  0xb2   : > { %3695 = vmatpush2.bf16.msra.mxu0 %v5364_v20  ;;  %v5448_v20 = vld [vmem:[%s6432_s29 + $0x3a0] ss:$8 sps:$4 sm:$0xff]  }
  0xb3   : > { %3736 = vmatpush2.bf16.msra.mxu1 %v5365_v22  ;;  %3746 = vmatprep.subr.bf16.mxu0 %v5369_v23  ;;  %v5456_v22 = vld [vmem:[%s6432_s29 + $0x394] ss:$8 sps:$4 sm:$0xff]   ;;  %v5451_v23 = vld [vmem:[%s6432_s29 + $0x290] ss:$8 sps:$4 sm:$0xff]  }
  0xb4   : > { %3787 = vmatprep.subr.bf16.mxu1 %v5372_v24  ;;  %v5454_v24 = vld [vmem:[%s6432_s29 + $0x390] ss:$8 sps:$4 sm:$0xff]  }
  0xb5   : > { %3697 = vmatmul.mubr.bf16.vlgmr.msra.gmra.mxu0 %v899_v21  ;;  %v5453_v21 = vld [vmem:[%s6432_s29 + $0x294] ss:$8 sps:$4 sm:$0xff]  }
  0xb6   : > { %3738 = vmatmul.mubr.bf16.vlgmr.msra.gmra.mxu1 %v921_v26  ;;  %3747 = vmatpush1.bf16.msra.mxu0 %v5367_v27  ;;  %v5462_v26 = vld [vmem:[%s6432_s29 + $0x384] ss:$8 sps:$4 sm:$0xff]   ;;  %v5457_v27 = vld [vmem:[%s6432_s29 + $0x280] ss:$8 sps:$4 sm:$0xff]  }
  0xb7   : > { %3788 = vmatpush1.bf16.msra.mxu1 %v5370_v28  ;;  %3748 = vmatprep.subr.bf16.mxu0 %v5375_v29  ;;  %v906_v28 = vrot.slane %v6528_v14, %v6508_v57  ;;  %v5460_v29 = vld [vmem:[%s6432_s29 + $0x380] ss:$8 sps:$4 sm:$0xff]   ;;  %v5471_v14 = vld [vmem:[%s6432_s29 + $0x464] ss:$8 sps:$4 sm:$0xff]  }
  0xb8   : > { %3789 = vmatprep.subr.bf16.mxu1 %v5378_v30  ;;  %3778 = vmatprep.mubr.bf16.mxu0 %v920_v25  ;;  %v5459_v25 = vld [vmem:[%s6432_s29 + $0x284] ss:$8 sps:$4 sm:$0xff]   ;;  %v5465_v30 = vld [vmem:[%s6432_s29 + $0x474] ss:$8 sps:$4 sm:$0xff]  }
  0xb9   : > { %3819 = vmatprep.mubr.bf16.mxu1 %v924_v31  ;;  %v5468_v31 = vld [vmem:[%s6432_s29 + $0x574] ss:$8 sps:$4 sm:$0xff]  }
  0xba   : > { %3749 = vmatpush1.bf16.msra.mxu0 %v5373_v32  ;;  %v922_v32 = vcombine.high %v906_v28, %v906_v28 }
  0xbb   : > { %3790 = vmatpush1.bf16.msra.mxu1 %v5376_v33  ;;  %3750 = vmatprep.subr.bf16.mxu0 %v5381_v34  ;;  %v5463_v33 = vld [vmem:[%s6432_s29 + $0x470] ss:$8 sps:$4 sm:$0xff]  }
  0xbc   : > { %3791 = vmatprep.subr.bf16.mxu1 %v5384_v35  ;;  %v5466_v34 = vld [vmem:[%s6432_s29 + $0x570] ss:$8 sps:$4 sm:$0xff]   ;;  %v6611_v35 = vld [vmem:[%s6451_s20 + $0x8] sm:$0xff] }
  0xbe   : > { %3751 = vmatpush1.bf16.msra.mxu0 %v5379_v36  ;;  %v5474_v36 = vld [vmem:[%s6432_s29 + $0x564] ss:$8 sps:$4 sm:$0xff]  }
  0xbf   : > { %3792 = vmatpush1.bf16.msra.mxu1 %v5382_v37  ;;  %3752 = vmatprep.subr.bf16.mxu0 %v5387_v38  ;;  %v6617_v37 = vrot.slane %v6611_v35, %v6508_v57 }
  0xc0   : > { %3793 = vmatprep.subr.bf16.mxu1 %v5390_v39  ;;  %v5469_v39 = vld [vmem:[%s6432_s29 + $0x460] ss:$8 sps:$4 sm:$0xff]  }
  0xc1   : > { %v940_v38 = vcombine.high %v6617_v37, %v6617_v37 }
  0xc2   : > { %3753 = vmatpush1.bf16.msra.mxu0 %v5385_v40  ;;  %v5472_v40 = vld [vmem:[%s6432_s29 + $0x560] ss:$8 sps:$4 sm:$0xff]  }
  0xc3   : > { %3794 = vmatpush1.bf16.msra.mxu1 %v5388_v41  ;;  %3754 = vmatprep.subr.bf16.mxu0 %v5393_v42  ;;  %v5477_v41 = vld [vmem:[%s6432_s29 + $0x454] ss:$8 sps:$4 sm:$0xff]  }
  0xc4   : > { %3795 = vmatprep.subr.bf16.mxu1 %v5396_v43  ;;  %v5480_v42 = vld [vmem:[%s6432_s29 + $0x554] ss:$8 sps:$4 sm:$0xff]   ;;  %v962_v43 = vrot.slane %v940_v38, %v6508_v57 }
  0xc6   : > { %3755 = vmatpush1.bf16.msra.mxu0 %v5391_v44  ;;  %v972_v44 = vcombine.high %v962_v43, %v962_v43 }
  0xc7   : > { %3796 = vmatpush1.bf16.msra.mxu1 %v5394_v45  ;;  %3756 = vmatprep.subr.bf16.mxu0 %v5399_v46  ;;  %v5475_v45 = vld [vmem:[%s6432_s29 + $0x450] ss:$8 sps:$4 sm:$0xff]  }
  0xc8   : > { %3797 = vmatprep.subr.bf16.mxu1 %v5402_v47  ;;  %v5478_v46 = vld [vmem:[%s6432_s29 + $0x550] ss:$8 sps:$4 sm:$0xff]   ;;  %v5483_v47 = vld [vmem:[%s6432_s29 + $0x444] ss:$8 sps:$4 sm:$0xff]  }
  0xca   : > { %3757 = vmatpush1.bf16.msra.mxu0 %v5397_v48  ;;  %v5486_v48 = vld [vmem:[%s6432_s29 + $0x544] ss:$8 sps:$4 sm:$0xff]  }
  0xcb   : > { %3798 = vmatpush1.bf16.msra.mxu1 %v5400_v49  ;;  %3758 = vmatprep.subr.bf16.mxu0 %v5405_v50  ;;  %v5481_v49 = vld [vmem:[%s6432_s29 + $0x440] ss:$8 sps:$4 sm:$0xff]  }
  0xcc   : > { %3799 = vmatprep.subr.bf16.mxu1 %v5408_v52  ;;  %v5484_v50 = vld [vmem:[%s6432_s29 + $0x540] ss:$8 sps:$4 sm:$0xff]   ;;  %v5489_v52 = vld [vmem:[%s6432_s29 + $0x434] ss:$8 sps:$4 sm:$0xff]  }
  0xce   : > { %3759 = vmatpush1.bf16.msra.mxu0 %v5403_v53  ;;  %v5492_v53 = vld [vmem:[%s6432_s29 + $0x534] ss:$8 sps:$4 sm:$0xff]  }
  0xcf   : > { %3800 = vmatpush1.bf16.msra.mxu1 %v5406_v54  ;;  %3760 = vmatprep.subr.bf16.mxu0 %v5411_v55  ;;  %v5487_v54 = vld [vmem:[%s6432_s29 + $0x430] ss:$8 sps:$4 sm:$0xff]  }
  0xd0   : > { %3801 = vmatprep.subr.bf16.mxu1 %v5414_v56  ;;  %v5490_v55 = vld [vmem:[%s6432_s29 + $0x530] ss:$8 sps:$4 sm:$0xff]   ;;  %v5495_v56 = vld [vmem:[%s6432_s29 + $0x424] ss:$8 sps:$4 sm:$0xff]  }
  0xd2   : > { %3761 = vmatpush1.bf16.msra.mxu0 %v5409_v58  ;;  %v5498_v58 = vld [vmem:[%s6432_s29 + $0x524] ss:$8 sps:$4 sm:$0xff]  }
  0xd3   : > { %3802 = vmatpush1.bf16.msra.mxu1 %v5412_v59  ;;  %3762 = vmatprep.subr.bf16.mxu0 %v5417_v60  ;;  %v5493_v59 = vld [vmem:[%s6432_s29 + $0x420] ss:$8 sps:$4 sm:$0xff]  }
  0xd4   : > { %3803 = vmatprep.subr.bf16.mxu1 %v5420_v61  ;;  %v5496_v60 = vld [vmem:[%s6432_s29 + $0x520] ss:$8 sps:$4 sm:$0xff]   ;;  %v5501_v61 = vld [vmem:[%s6432_s29 + $0x414] ss:$8 sps:$4 sm:$0xff]  }
  0xd6   : > { %3763 = vmatpush2.bf16.msra.mxu0 %v5415_v62  ;;  %v5504_v62 = vld [vmem:[%s6432_s29 + $0x514] ss:$8 sps:$4 sm:$0xff]  }
  0xd7   : > { %3804 = vmatpush2.bf16.msra.mxu1 %v5418_v63  ;;  %3764 = vmatprep.subr.bf16.mxu0 %v5423_v0  ;;  %v5499_v63 = vld [vmem:[%s6432_s29 + $0x410] ss:$8 sps:$4 sm:$0xff]  }
  0xd8   : > { %3805 = vmatprep.subr.bf16.mxu1 %v5426_v1  ;;  %v5502_v0 = vld [vmem:[%s6432_s29 + $0x510] ss:$8 sps:$4 sm:$0xff]   ;;  %v5507_v1 = vld [vmem:[%s6432_s29 + $0x404] ss:$8 sps:$4 sm:$0xff]  }
  0xda   : > { %3765 = vmatpush2.bf16.msra.mxu0 %v5421_v2  ;;  %v5510_v2 = vld [vmem:[%s6432_s29 + $0x504] ss:$8 sps:$4 sm:$0xff]  }
  0xdb   : > { %3806 = vmatpush2.bf16.msra.mxu1 %v5424_v3  ;;  %3766 = vmatprep.subr.bf16.mxu0 %v5429_v4  ;;  %v5505_v3 = vld [vmem:[%s6432_s29 + $0x400] ss:$8 sps:$4 sm:$0xff]  }
  0xdc   : > { %3807 = vmatprep.subr.bf16.mxu1 %v5432_v5  ;;  %v5508_v4 = vld [vmem:[%s6432_s29 + $0x500] ss:$8 sps:$4 sm:$0xff]   ;;  %v5513_v5 = vld [vmem:[%s6432_s29 + $0x4f4] ss:$8 sps:$4 sm:$0xff]  }
  0xde   : > { %3767 = vmatpush2.bf16.msra.mxu0 %v5427_v6  ;;  %v5516_v6 = vld [vmem:[%s6432_s29 + $0x5f4] ss:$8 sps:$4 sm:$0xff]  }
  0xdf   : > { %3808 = vmatpush2.bf16.msra.mxu1 %v5430_v7  ;;  %3768 = vmatprep.subr.bf16.mxu0 %v5435_v8  ;;  %v5511_v7 = vld [vmem:[%s6432_s29 + $0x4f0] ss:$8 sps:$4 sm:$0xff]  }
  0xe0   : > { %3809 = vmatprep.subr.bf16.mxu1 %v5438_v9  ;;  %v5514_v8 = vld [vmem:[%s6432_s29 + $0x5f0] ss:$8 sps:$4 sm:$0xff]   ;;  %v5519_v9 = vld [vmem:[%s6432_s29 + $0x4e4] ss:$8 sps:$4 sm:$0xff]  }
  0xe2   : > { %3769 = vmatpush2.bf16.msra.mxu0 %v5433_v10  ;;  %v5522_v10 = vld [vmem:[%s6432_s29 + $0x5e4] ss:$8 sps:$4 sm:$0xff]  }
  0xe3   : > { %3810 = vmatpush2.bf16.msra.mxu1 %v5436_v11  ;;  %3770 = vmatprep.subr.bf16.mxu0 %v5441_v12  ;;  %v5517_v11 = vld [vmem:[%s6432_s29 + $0x4e0] ss:$8 sps:$4 sm:$0xff]  }
  0xe4   : > { %3811 = vmatprep.subr.bf16.mxu1 %v5444_v13  ;;  %v5520_v12 = vld [vmem:[%s6432_s29 + $0x5e0] ss:$8 sps:$4 sm:$0xff]   ;;  %v5525_v13 = vld [vmem:[%s6432_s29 + $0x4d4] ss:$8 sps:$4 sm:$0xff]  }
  0xe6   : > { %3771 = vmatpush2.bf16.msra.mxu0 %v5439_v15  ;;  %v5528_v15 = vld [vmem:[%s6432_s29 + $0x5d4] ss:$8 sps:$4 sm:$0xff]  }
  0xe7   : > { %3812 = vmatpush2.bf16.msra.mxu1 %v5442_v16  ;;  %3772 = vmatprep.subr.bf16.mxu0 %v5447_v17  ;;  %v5523_v16 = vld [vmem:[%s6432_s29 + $0x4d0] ss:$8 sps:$4 sm:$0xff]  }
  0xe8   : > { %3813 = vmatprep.subr.bf16.mxu1 %v5450_v18  ;;  %v5526_v17 = vld [vmem:[%s6432_s29 + $0x5d0] ss:$8 sps:$4 sm:$0xff]   ;;  %v5531_v18 = vld [vmem:[%s6432_s29 + $0x4c4] ss:$8 sps:$4 sm:$0xff]  }
  0xea   : > { %3773 = vmatpush2.bf16.msra.mxu0 %v5445_v19  ;;  %v5534_v19 = vld [vmem:[%s6432_s29 + $0x5c4] ss:$8 sps:$4 sm:$0xff]  }
  0xeb   : > { %3814 = vmatpush2.bf16.msra.mxu1 %v5448_v20  ;;  %3774 = vmatprep.subr.bf16.mxu0 %v5453_v21  ;;  %v5529_v20 = vld [vmem:[%s6432_s29 + $0x4c0] ss:$8 sps:$4 sm:$0xff]  }
  0xec   : > { %3815 = vmatprep.subr.bf16.mxu1 %v5456_v22  ;;  %v5532_v21 = vld [vmem:[%s6432_s29 + $0x5c0] ss:$8 sps:$4 sm:$0xff]   ;;  %v5537_v22 = vld [vmem:[%s6432_s29 + $0x4b4] ss:$8 sps:$4 sm:$0xff]  }
  0xee   : > { %3775 = vmatpush2.bf16.msra.mxu0 %v5451_v23  ;;  %v5540_v23 = vld [vmem:[%s6432_s29 + $0x5b4] ss:$8 sps:$4 sm:$0xff]  }
  0xef   : > { %3816 = vmatpush2.bf16.msra.mxu1 %v5454_v24  ;;  %3776 = vmatprep.subr.bf16.mxu0 %v5459_v25  ;;  %v5535_v24 = vld [vmem:[%s6432_s29 + $0x4b0] ss:$8 sps:$4 sm:$0xff]  }
  0xf0   : > { %3817 = vmatprep.subr.bf16.mxu1 %v5462_v26  ;;  %v5538_v25 = vld [vmem:[%s6432_s29 + $0x5b0] ss:$8 sps:$4 sm:$0xff]   ;;  %v5543_v26 = vld [vmem:[%s6432_s29 + $0x4a4] ss:$8 sps:$4 sm:$0xff]  }
  0xf2   : > { %3777 = vmatpush2.bf16.msra.mxu0 %v5457_v27  ;;  %v5546_v27 = vld [vmem:[%s6432_s29 + $0x5a4] ss:$8 sps:$4 sm:$0xff]  }
  0xf3   : > { %3818 = vmatpush2.bf16.msra.mxu1 %v5460_v29  ;;  %3828 = vmatprep.subr.bf16.mxu0 %v5465_v30  ;;  %v5541_v29 = vld [vmem:[%s6432_s29 + $0x4a0] ss:$8 sps:$4 sm:$0xff]  }
  0xf4   : > { %3869 = vmatprep.subr.bf16.mxu1 %v5468_v31  ;;  %v5544_v30 = vld [vmem:[%s6432_s29 + $0x5a0] ss:$8 sps:$4 sm:$0xff]   ;;  %v5549_v31 = vld [vmem:[%s6432_s29 + $0x494] ss:$8 sps:$4 sm:$0xff]  }
  0xf5   : > { %3779 = vmatmul.mubr.bf16.vlgmr.msra.gmra.mxu0 %v906_v28  ;;  %v925_v28 = vcombine.high %v6611_v35, %v6611_v35  ;;  %v5550_v35 = vld [vmem:[%s6432_s29 + $0x590] ss:$8 sps:$4 sm:$0xff]  }
  0xf6   : > { %3820 = vmatmul.mubr.bf16.vlgmr.msra.gmra.mxu1 %v922_v32  ;;  %3829 = vmatpush1.bf16.msra.mxu0 %v5463_v33  ;;  %v5552_v32 = vld [vmem:[%s6432_s29 + $0x594] ss:$8 sps:$4 sm:$0xff]  }
  0xf7   : > { %3870 = vmatpush1.bf16.msra.mxu1 %v5466_v34  ;;  %3830 = vmatprep.subr.bf16.mxu0 %v5471_v14  ;;  %v6677_v33 = vrot.slane %v925_v28, %v6508_v57  ;;  %v5547_v34 = vld [vmem:[%s6432_s29 + $0x490] ss:$8 sps:$4 sm:$0xff]   ;;  %v5555_v14 = vld [vmem:[%s6432_s29 + $0x484] ss:$8 sps:$4 sm:$0xff]  }
  0xf8   : > { %3871 = vmatprep.subr.bf16.mxu1 %v5474_v36  ;;  %3860 = vmatprep.mubr.bf16.mxu0 %v962_v43  ;;  %v5558_v36 = vld [vmem:[%s6432_s29 + $0x584] ss:$8 sps:$4 sm:$0xff]   ;;  %v5564_v43 = vld [vmem:[%s6432_s29 + $0x774] ss:$8 sps:$4 sm:$0xff]  }
  0xf9   : > { %3901 = vmatprep.mubr.bf16.mxu1 %v972_v44  ;;  %v941_v38 = vcombine.high %v6677_v33, %v6677_v33  ;;  %v5630_v28 = vld [vmem:[%s6432_s29 + $0x7c4] ss:$8 sps:$4 sm:$0xff]  }
  0xfa   : > { %3831 = vmatpush1.bf16.msra.mxu0 %v5469_v39  ;;  %v948_v39 = vrot.slane %v6617_v37, %v6508_v57  ;;  %v5562_v37 = vld [vmem:[%s6432_s29 + $0x770] ss:$8 sps:$4 sm:$0xff]  }
  0xfb   : > { %3872 = vmatpush1.bf16.msra.mxu1 %v5472_v40  ;;  %3832 = vmatprep.subr.bf16.mxu0 %v5477_v41  ;;  %v5553_v40 = vld [vmem:[%s6432_s29 + $0x480] ss:$8 sps:$4 sm:$0xff]   ;;  %v969_v44 = vrot.slane %v941_v38, %v6508_v57 }
  0xfc   : > { %3873 = vmatprep.subr.bf16.mxu1 %v5480_v42  ;;  %v5556_v41 = vld [vmem:[%s6432_s29 + $0x580] ss:$8 sps:$4 sm:$0xff]   ;;  %v5561_v42 = vld [vmem:[%s6432_s29 + $0x674] ss:$8 sps:$4 sm:$0xff]  }
  0xfd   : > { %v5637_v38 = vld [vmem:[%s6432_s29 + $0x6a0] ss:$8 sps:$4 sm:$0xff]  }
  0xfe   : > { %3833 = vmatpush1.bf16.msra.mxu0 %v5475_v45  ;;  %v970_v45 = vcombine.high %v948_v39, %v948_v39 }
  0xff   : > { %3874 = vmatpush1.bf16.msra.mxu1 %v5478_v46  ;;  %3834 = vmatprep.subr.bf16.mxu0 %v5483_v47  ;;  %v5559_v46 = vld [vmem:[%s6432_s29 + $0x670] ss:$8 sps:$4 sm:$0xff]   ;;  %v5567_v47 = vld [vmem:[%s6432_s29 + $0x664] ss:$8 sps:$4 sm:$0xff]  }
 0x100   : > { %3875 = vmatprep.subr.bf16.mxu1 %v5486_v48  ;;  %v5570_v48 = vld [vmem:[%s6432_s29 + $0x764] ss:$8 sps:$4 sm:$0xff]  }
 0x102   : > { %3835 = vmatpush1.bf16.msra.mxu0 %v5481_v49  ;;  %v973_v49 = vcombine.high %v969_v44, %v969_v44 }
 0x103   : > { %3876 = vmatpush1.bf16.msra.mxu1 %v5484_v50  ;;  %3836 = vmatprep.subr.bf16.mxu0 %v5489_v52  ;;  %v5565_v50 = vld [vmem:[%s6432_s29 + $0x660] ss:$8 sps:$4 sm:$0xff]  }
 0x104   : > { %3877 = vmatprep.subr.bf16.mxu1 %v5492_v53  ;;  %v5568_v52 = vld [vmem:[%s6432_s29 + $0x760] ss:$8 sps:$4 sm:$0xff]   ;;  %v5573_v53 = vld [vmem:[%s6432_s29 + $0x654] ss:$8 sps:$4 sm:$0xff]  }
 0x106   : > { %3837 = vmatpush1.bf16.msra.mxu0 %v5487_v54  ;;  %v5576_v54 = vld [vmem:[%s6432_s29 + $0x754] ss:$8 sps:$4 sm:$0xff]  }
 0x107   : > { %3878 = vmatpush1.bf16.msra.mxu1 %v5490_v55  ;;  %3838 = vmatprep.subr.bf16.mxu0 %v5495_v56  ;;  %v5571_v55 = vld [vmem:[%s6432_s29 + $0x650] ss:$8 sps:$4 sm:$0xff]  }
 0x108   : > { %3879 = vmatprep.subr.bf16.mxu1 %v5498_v58  ;;  %v5574_v56 = vld [vmem:[%s6432_s29 + $0x750] ss:$8 sps:$4 sm:$0xff]   ;;  %v5579_v58 = vld [vmem:[%s6432_s29 + $0x644] ss:$8 sps:$4 sm:$0xff]  }
 0x10a   : > { %3839 = vmatpush1.bf16.msra.mxu0 %v5493_v59  ;;  %v5582_v59 = vld [vmem:[%s6432_s29 + $0x744] ss:$8 sps:$4 sm:$0xff]  }
 0x10b   : > { %3880 = vmatpush1.bf16.msra.mxu1 %v5496_v60  ;;  %3840 = vmatprep.subr.bf16.mxu0 %v5501_v61  ;;  %v5577_v60 = vld [vmem:[%s6432_s29 + $0x640] ss:$8 sps:$4 sm:$0xff]  }
 0x10c   : > { %3881 = vmatprep.subr.bf16.mxu1 %v5504_v62  ;;  %v5580_v61 = vld [vmem:[%s6432_s29 + $0x740] ss:$8 sps:$4 sm:$0xff]   ;;  %v5585_v62 = vld [vmem:[%s6432_s29 + $0x634] ss:$8 sps:$4 sm:$0xff]  }
 0x10e   : > { %3841 = vmatpush1.bf16.msra.mxu0 %v5499_v63  ;;  %v5588_v63 = vld [vmem:[%s6432_s29 + $0x734] ss:$8 sps:$4 sm:$0xff]  }
 0x10f   : > { %3882 = vmatpush1.bf16.msra.mxu1 %v5502_v0  ;;  %3842 = vmatprep.subr.bf16.mxu0 %v5507_v1  ;;  %v5583_v0 = vld [vmem:[%s6432_s29 + $0x630] ss:$8 sps:$4 sm:$0xff]  }
 0x110   : > { %3883 = vmatprep.subr.bf16.mxu1 %v5510_v2  ;;  %v5586_v1 = vld [vmem:[%s6432_s29 + $0x730] ss:$8 sps:$4 sm:$0xff]   ;;  %v5591_v2 = vld [vmem:[%s6432_s29 + $0x624] ss:$8 sps:$4 sm:$0xff]  }
 0x112   : > { %3843 = vmatpush1.bf16.msra.mxu0 %v5505_v3  ;;  %v5594_v3 = vld [vmem:[%s6432_s29 + $0x724] ss:$8 sps:$4 sm:$0xff]  }
 0x113   : > { %3884 = vmatpush1.bf16.msra.mxu1 %v5508_v4  ;;  %3844 = vmatprep.subr.bf16.mxu0 %v5513_v5  ;;  %v5589_v4 = vld [vmem:[%s6432_s29 + $0x620] ss:$8 sps:$4 sm:$0xff]  }
 0x114   : > { %3885 = vmatprep.subr.bf16.mxu1 %v5516_v6  ;;  %v5592_v5 = vld [vmem:[%s6432_s29 + $0x720] ss:$8 sps:$4 sm:$0xff]   ;;  %v5597_v6 = vld [vmem:[%s6432_s29 + $0x614] ss:$8 sps:$4 sm:$0xff]  }
 0x116   : > { %3845 = vmatpush2.bf16.msra.mxu0 %v5511_v7  ;;  %v5600_v7 = vld [vmem:[%s6432_s29 + $0x714] ss:$8 sps:$4 sm:$0xff]  }
 0x117   : > { %3886 = vmatpush2.bf16.msra.mxu1 %v5514_v8  ;;  %3846 = vmatprep.subr.bf16.mxu0 %v5519_v9  ;;  %v5595_v8 = vld [vmem:[%s6432_s29 + $0x610] ss:$8 sps:$4 sm:$0xff]  }
 0x118   : > { %3887 = vmatprep.subr.bf16.mxu1 %v5522_v10  ;;  %v5598_v9 = vld [vmem:[%s6432_s29 + $0x710] ss:$8 sps:$4 sm:$0xff]   ;;  %v5603_v10 = vld [vmem:[%s6432_s29 + $0x604] ss:$8 sps:$4 sm:$0xff]  }
 0x11a   : > { %3847 = vmatpush2.bf16.msra.mxu0 %v5517_v11  ;;  %v5606_v11 = vld [vmem:[%s6432_s29 + $0x704] ss:$8 sps:$4 sm:$0xff]  }
 0x11b   : > { %3888 = vmatpush2.bf16.msra.mxu1 %v5520_v12  ;;  %3848 = vmatprep.subr.bf16.mxu0 %v5525_v13  ;;  %v5601_v12 = vld [vmem:[%s6432_s29 + $0x600] ss:$8 sps:$4 sm:$0xff]  }
 0x11c   : > { %3889 = vmatprep.subr.bf16.mxu1 %v5528_v15  ;;  %v5604_v13 = vld [vmem:[%s6432_s29 + $0x700] ss:$8 sps:$4 sm:$0xff]   ;;  %v5609_v15 = vld [vmem:[%s6432_s29 + $0x6f4] ss:$8 sps:$4 sm:$0xff]  }
 0x11e   : > { %3849 = vmatpush2.bf16.msra.mxu0 %v5523_v16  ;;  %v5612_v16 = vld [vmem:[%s6432_s29 + $0x7f4] ss:$8 sps:$4 sm:$0xff]  }
 0x11f   : > { %3890 = vmatpush2.bf16.msra.mxu1 %v5526_v17  ;;  %3850 = vmatprep.subr.bf16.mxu0 %v5531_v18  ;;  %v5607_v17 = vld [vmem:[%s6432_s29 + $0x6f0] ss:$8 sps:$4 sm:$0xff]  }
 0x120   : > { %3891 = vmatprep.subr.bf16.mxu1 %v5534_v19  ;;  %v5610_v18 = vld [vmem:[%s6432_s29 + $0x7f0] ss:$8 sps:$4 sm:$0xff]   ;;  %v5615_v19 = vld [vmem:[%s6432_s29 + $0x6e4] ss:$8 sps:$4 sm:$0xff]  }
 0x122   : > { %3851 = vmatpush2.bf16.msra.mxu0 %v5529_v20  ;;  %v5618_v20 = vld [vmem:[%s6432_s29 + $0x7e4] ss:$8 sps:$4 sm:$0xff]  }
 0x123   : > { %3892 = vmatpush2.bf16.msra.mxu1 %v5532_v21  ;;  %3852 = vmatprep.subr.bf16.mxu0 %v5537_v22  ;;  %v5613_v21 = vld [vmem:[%s6432_s29 + $0x6e0] ss:$8 sps:$4 sm:$0xff]  }
 0x124   : > { %3893 = vmatprep.subr.bf16.mxu1 %v5540_v23  ;;  %v5616_v22 = vld [vmem:[%s6432_s29 + $0x7e0] ss:$8 sps:$4 sm:$0xff]   ;;  %v5621_v23 = vld [vmem:[%s6432_s29 + $0x6d4] ss:$8 sps:$4 sm:$0xff]  }
 0x126   : > { %3853 = vmatpush2.bf16.msra.mxu0 %v5535_v24  ;;  %v5624_v24 = vld [vmem:[%s6432_s29 + $0x7d4] ss:$8 sps:$4 sm:$0xff]  }
 0x127   : > { %3894 = vmatpush2.bf16.msra.mxu1 %v5538_v25  ;;  %3854 = vmatprep.subr.bf16.mxu0 %v5543_v26  ;;  %v5619_v25 = vld [vmem:[%s6432_s29 + $0x6d0] ss:$8 sps:$4 sm:$0xff]  }
 0x128   : > { %3895 = vmatprep.subr.bf16.mxu1 %v5546_v27  ;;  %v5622_v26 = vld [vmem:[%s6432_s29 + $0x7d0] ss:$8 sps:$4 sm:$0xff]   ;;  %v5627_v27 = vld [vmem:[%s6432_s29 + $0x6c4] ss:$8 sps:$4 sm:$0xff]  }
 0x12a   : > { %3855 = vmatpush2.bf16.msra.mxu0 %v5541_v29  ;;  %v5625_v29 = vld [vmem:[%s6432_s29 + $0x6c0] ss:$8 sps:$4 sm:$0xff]  }
 0x12b   : > { %3896 = vmatpush2.bf16.msra.mxu1 %v5544_v30  ;;  %3856 = vmatprep.subr.bf16.mxu0 %v5549_v31  ;;  %v5628_v30 = vld [vmem:[%s6432_s29 + $0x7c0] ss:$8 sps:$4 sm:$0xff]   ;;  %v5633_v31 = vld [vmem:[%s6432_s29 + $0x6b4] ss:$8 sps:$4 sm:$0xff]  }
 0x12c   : > { %3897 = vmatprep.subr.bf16.mxu1 %v5552_v32  ;;  %v5636_v32 = vld [vmem:[%s6432_s29 + $0x7b4] ss:$8 sps:$4 sm:$0xff]  }
 0x12e   : > { %3857 = vmatpush2.bf16.msra.mxu0 %v5547_v34  ;;  %v5631_v34 = vld [vmem:[%s6432_s29 + $0x6b0] ss:$8 sps:$4 sm:$0xff]  }
 0x12f   : > { %3898 = vmatpush2.bf16.msra.mxu1 %v5550_v35  ;;  %3858 = vmatprep.subr.bf16.mxu0 %v5555_v14  ;;  %v5634_v35 = vld [vmem:[%s6432_s29 + $0x7b0] ss:$8 sps:$4 sm:$0xff]   ;;  %v5639_v14 = vld [vmem:[%s6432_s29 + $0x6a4] ss:$8 sps:$4 sm:$0xff]  }
 0x130   : > { %3899 = vmatprep.subr.bf16.mxu1 %v5558_v36  ;;  %v5642_v36 = vld [vmem:[%s6432_s29 + $0x7a4] ss:$8 sps:$4 sm:$0xff]  }
 0x132   : > { %3859 = vmatpush2.bf16.msra.mxu0 %v5553_v40  ;;  %v5640_v40 = vld [vmem:[%s6432_s29 + $0x7a0] ss:$8 sps:$4 sm:$0xff]  }
 0x133   : > { %3900 = vmatpush2.bf16.msra.mxu1 %v5556_v41  ;;  %3910 = vmatprep.subr.bf16.mxu0 %v5561_v42  ;;  %v5645_v41 = vld [vmem:[%s6432_s29 + $0x694] ss:$8 sps:$4 sm:$0xff]  }
 0x134   : > { %3951 = vmatprep.subr.bf16.mxu1 %v5564_v43  ;;  %v5648_v42 = vld [vmem:[%s6432_s29 + $0x794] ss:$8 sps:$4 sm:$0xff]  }
 0x135   : > { %3861 = vmatmul.mubr.bf16.vlgmr.msra.gmra.mxu0 %v948_v39  ;;  %v6746_v39 = vld [vmem:[%s6451_s20 + $0x10] sm:$0xff] }
 0x136   : > { %3902 = vmatmul.mubr.bf16.vlgmr.msra.gmra.mxu1 %v970_v45  ;;  %3911 = vmatpush1.bf16.msra.mxu0 %v5559_v46  ;;  %v6753_v43 = vrot.slane %v6746_v39, %v6508_v57  ;;  %v5646_v45 = vld [vmem:[%s6432_s29 + $0x790] ss:$8 sps:$4 sm:$0xff]   ;;  %v5651_v46 = vld [vmem:[%s6432_s29 + $0x684] ss:$8 sps:$4 sm:$0xff]  }
 0x137   : > { %3952 = vmatpush1.bf16.msra.mxu1 %v5562_v37  ;;  %3912 = vmatprep.subr.bf16.mxu0 %v5567_v47  ;;  %v5654_v37 = vld [vmem:[%s6432_s29 + $0x784] ss:$8 sps:$4 sm:$0xff]  }
 0x138   : > { %3953 = vmatprep.subr.bf16.mxu1 %v5570_v48  ;;  %3942 = vmatprep.mubr.bf16.mxu0 %v969_v44  ;;  %v5643_v44 = vld [vmem:[%s6432_s29 + $0x690] ss:$8 sps:$4 sm:$0xff]   ;;  %v989_v47 = vcombine.high %v6753_v43, %v6753_v43  ;;  %v5649_v48 = vld [vmem:[%s6432_s29 + $0x680] ss:$8 sps:$4 sm:$0xff]  }
 0x139   : > { %3983 = vmatprep.mubr.bf16.mxu1 %v973_v49  ;;  %v955_v49 = vrot.slane %v6677_v33, %v6508_v57  ;;  %v5667_v33 = vld [vmem:[%s6432_s29 + $0x964] ss:$8 sps:$4 sm:$0xff]  }
 0x13a   : > { %3913 = vmatpush1.bf16.msra.mxu0 %v5565_v50  ;;  %v5652_v50 = vld [vmem:[%s6432_s29 + $0x780] ss:$8 sps:$4 sm:$0xff]  }
 0x13b   : > { %3954 = vmatpush1.bf16.msra.mxu1 %v5568_v52  ;;  %3914 = vmatprep.subr.bf16.mxu0 %v5573_v53  ;;  %v5658_v52 = vld [vmem:[%s6432_s29 + $0x874] ss:$8 sps:$4 sm:$0xff]  }
 0x13c   : > { %3955 = vmatprep.subr.bf16.mxu1 %v5576_v54  ;;  %v5661_v53 = vld [vmem:[%s6432_s29 + $0x974] ss:$8 sps:$4 sm:$0xff]   ;;  %v1011_v54 = vrot.slane %v989_v47, %v6508_v57  ;;  %v5719_v47 = vld [vmem:[%s6432_s29 + $0x9d0] ss:$8 sps:$4 sm:$0xff]  }
 0x13e   : > { %3915 = vmatpush1.bf16.msra.mxu0 %v5571_v55  ;;  %v971_v55 = vcombine.high %v955_v49, %v955_v49 }
 0x13f   : > { %3956 = vmatpush1.bf16.msra.mxu1 %v5574_v56  ;;  %3916 = vmatprep.subr.bf16.mxu0 %v5579_v58  ;;  %v5656_v56 = vld [vmem:[%s6432_s29 + $0x870] ss:$8 sps:$4 sm:$0xff]  }
 0x140   : > { %3957 = vmatprep.subr.bf16.mxu1 %v5582_v59  ;;  %v5659_v58 = vld [vmem:[%s6432_s29 + $0x970] ss:$8 sps:$4 sm:$0xff]   ;;  %v5664_v59 = vld [vmem:[%s6432_s29 + $0x864] ss:$8 sps:$4 sm:$0xff]  }
 0x142   : > { %3917 = vmatpush1.bf16.msra.mxu0 %v5577_v60  ;;  %v1021_v60 = vcombine.high %v1011_v54, %v1011_v54 }
 0x143   : > { %3958 = vmatpush1.bf16.msra.mxu1 %v5580_v61  ;;  %3918 = vmatprep.subr.bf16.mxu0 %v5585_v62 }
 0x144   : > { %3959 = vmatprep.subr.bf16.mxu1 %v5588_v63  ;;  %v5662_v63 = vld [vmem:[%s6432_s29 + $0x860] ss:$8 sps:$4 sm:$0xff]  }
 0x146   : > { %3919 = vmatpush1.bf16.msra.mxu0 %v5583_v0  ;;  %v5665_v0 = vld [vmem:[%s6432_s29 + $0x960] ss:$8 sps:$4 sm:$0xff]  }
 0x147   : > { %3960 = vmatpush1.bf16.msra.mxu1 %v5586_v1  ;;  %3920 = vmatprep.subr.bf16.mxu0 %v5591_v2 }
 0x148   : > { %3961 = vmatprep.subr.bf16.mxu1 %v5594_v3 }
 0x14a   : > { %3921 = vmatpush1.bf16.msra.mxu0 %v5589_v4  ;;  %v5670_v4 = vld [vmem:[%s6432_s29 + $0x854] ss:$8 sps:$4 sm:$0xff]  }
 0x14b   : > { %3962 = vmatpush1.bf16.msra.mxu1 %v5592_v5  ;;  %3922 = vmatprep.subr.bf16.mxu0 %v5597_v6  ;;  %v5673_v5 = vld [vmem:[%s6432_s29 + $0x954] ss:$8 sps:$4 sm:$0xff]  }
 0x14c   : > { %3963 = vmatprep.subr.bf16.mxu1 %v5600_v7  ;;  %v5668_v7 = vld [vmem:[%s6432_s29 + $0x850] ss:$8 sps:$4 sm:$0xff]  }
 0x14e   : > { %3923 = vmatpush1.bf16.msra.mxu0 %v5595_v8  ;;  %v5671_v8 = vld [vmem:[%s6432_s29 + $0x950] ss:$8 sps:$4 sm:$0xff]  }
 0x14f   : > { %3964 = vmatpush1.bf16.msra.mxu1 %v5598_v9  ;;  %3924 = vmatprep.subr.bf16.mxu0 %v5603_v10 }
 0x150   : > { %3965 = vmatprep.subr.bf16.mxu1 %v5606_v11 }
 0x152   : > { %3925 = vmatpush1.bf16.msra.mxu0 %v5601_v12 }
 0x153   : > { %3966 = vmatpush1.bf16.msra.mxu1 %v5604_v13  ;;  %3926 = vmatprep.subr.bf16.mxu0 %v5609_v15  ;;  %v5676_v13 = vld [vmem:[%s6432_s29 + $0x844] ss:$8 sps:$4 sm:$0xff]  }
 0x154   : > { %3967 = vmatprep.subr.bf16.mxu1 %v5612_v16  ;;  %v5679_v15 = vld [vmem:[%s6432_s29 + $0x944] ss:$8 sps:$4 sm:$0xff]   ;;  %v5674_v16 = vld [vmem:[%s6432_s29 + $0x840] ss:$8 sps:$4 sm:$0xff]  }
 0x156   : > { %3927 = vmatpush2.bf16.msra.mxu0 %v5607_v17  ;;  %v5677_v17 = vld [vmem:[%s6432_s29 + $0x940] ss:$8 sps:$4 sm:$0xff]  }
 0x157   : > { %3968 = vmatpush2.bf16.msra.mxu1 %v5610_v18  ;;  %3928 = vmatprep.subr.bf16.mxu0 %v5615_v19  ;;  %v5682_v18 = vld [vmem:[%s6432_s29 + $0x834] ss:$8 sps:$4 sm:$0xff]  }
 0x158   : > { %3969 = vmatprep.subr.bf16.mxu1 %v5618_v20  ;;  %v5685_v19 = vld [vmem:[%s6432_s29 + $0x934] ss:$8 sps:$4 sm:$0xff]   ;;  %v5680_v20 = vld [vmem:[%s6432_s29 + $0x830] ss:$8 sps:$4 sm:$0xff]  }
 0x15a   : > { %3929 = vmatpush2.bf16.msra.mxu0 %v5613_v21  ;;  %v5683_v21 = vld [vmem:[%s6432_s29 + $0x930] ss:$8 sps:$4 sm:$0xff]  }
 0x15b   : > { %3970 = vmatpush2.bf16.msra.mxu1 %v5616_v22  ;;  %3930 = vmatprep.subr.bf16.mxu0 %v5621_v23  ;;  %v5688_v22 = vld [vmem:[%s6432_s29 + $0x824] ss:$8 sps:$4 sm:$0xff]  }
 0x15c   : > { %3971 = vmatprep.subr.bf16.mxu1 %v5624_v24  ;;  %v5691_v23 = vld [vmem:[%s6432_s29 + $0x924] ss:$8 sps:$4 sm:$0xff]   ;;  %v5686_v24 = vld [vmem:[%s6432_s29 + $0x820] ss:$8 sps:$4 sm:$0xff]  }
 0x15e   : > { %3931 = vmatpush2.bf16.msra.mxu0 %v5619_v25  ;;  %v5689_v25 = vld [vmem:[%s6432_s29 + $0x920] ss:$8 sps:$4 sm:$0xff]  }
 0x15f   : > { %3972 = vmatpush2.bf16.msra.mxu1 %v5622_v26  ;;  %3932 = vmatprep.subr.bf16.mxu0 %v5627_v27  ;;  %v5694_v26 = vld [vmem:[%s6432_s29 + $0x814] ss:$8 sps:$4 sm:$0xff]  }
 0x160   : > { %3973 = vmatprep.subr.bf16.mxu1 %v5630_v28  ;;  %v5697_v27 = vld [vmem:[%s6432_s29 + $0x914] ss:$8 sps:$4 sm:$0xff]   ;;  %v5692_v28 = vld [vmem:[%s6432_s29 + $0x810] ss:$8 sps:$4 sm:$0xff]  }
 0x162   : > { %3933 = vmatpush2.bf16.msra.mxu0 %v5625_v29  ;;  %v5695_v29 = vld [vmem:[%s6432_s29 + $0x910] ss:$8 sps:$4 sm:$0xff]  }
 0x163   : > { %3974 = vmatpush2.bf16.msra.mxu1 %v5628_v30  ;;  %3934 = vmatprep.subr.bf16.mxu0 %v5633_v31  ;;  %v5700_v30 = vld [vmem:[%s6432_s29 + $0x804] ss:$8 sps:$4 sm:$0xff]  }
 0x164   : > { %3975 = vmatprep.subr.bf16.mxu1 %v5636_v32  ;;  %v5703_v31 = vld [vmem:[%s6432_s29 + $0x904] ss:$8 sps:$4 sm:$0xff]   ;;  %v5698_v32 = vld [vmem:[%s6432_s29 + $0x800] ss:$8 sps:$4 sm:$0xff]  }
 0x166   : > { %3935 = vmatpush2.bf16.msra.mxu0 %v5631_v34  ;;  %v5701_v34 = vld [vmem:[%s6432_s29 + $0x900] ss:$8 sps:$4 sm:$0xff]  }
 0x167   : > { %3976 = vmatpush2.bf16.msra.mxu1 %v5634_v35  ;;  %3936 = vmatprep.subr.bf16.mxu0 %v5639_v14  ;;  %v5706_v35 = vld [vmem:[%s6432_s29 + $0x8f4] ss:$8 sps:$4 sm:$0xff]  }
 0x168   : > { %3977 = vmatprep.subr.bf16.mxu1 %v5642_v36  ;;  %v5709_v14 = vld [vmem:[%s6432_s29 + $0x9f4] ss:$8 sps:$4 sm:$0xff]   ;;  %v5704_v36 = vld [vmem:[%s6432_s29 + $0x8f0] ss:$8 sps:$4 sm:$0xff]  }
 0x16a   : > { %3937 = vmatpush2.bf16.msra.mxu0 %v5637_v38  ;;  %v5707_v38 = vld [vmem:[%s6432_s29 + $0x9f0] ss:$8 sps:$4 sm:$0xff]  }
 0x16b   : > { %3978 = vmatpush2.bf16.msra.mxu1 %v5640_v40  ;;  %3938 = vmatprep.subr.bf16.mxu0 %v5645_v41  ;;  %v5712_v40 = vld [vmem:[%s6432_s29 + $0x8e4] ss:$8 sps:$4 sm:$0xff]  }
 0x16c   : > { %3979 = vmatprep.subr.bf16.mxu1 %v5648_v42  ;;  %v5715_v41 = vld [vmem:[%s6432_s29 + $0x9e4] ss:$8 sps:$4 sm:$0xff]   ;;  %v5710_v42 = vld [vmem:[%s6432_s29 + $0x8e0] ss:$8 sps:$4 sm:$0xff]  }
 0x16e   : > { %3939 = vmatpush2.bf16.msra.mxu0 %v5643_v44  ;;  %v5713_v44 = vld [vmem:[%s6432_s29 + $0x9e0] ss:$8 sps:$4 sm:$0xff]  }
 0x16f   : > { %3980 = vmatpush2.bf16.msra.mxu1 %v5646_v45  ;;  %3940 = vmatprep.subr.bf16.mxu0 %v5651_v46  ;;  %v5718_v45 = vld [vmem:[%s6432_s29 + $0x8d4] ss:$8 sps:$4 sm:$0xff]  }
 0x170   : > { %3981 = vmatprep.subr.bf16.mxu1 %v5654_v37  ;;  %v5721_v46 = vld [vmem:[%s6432_s29 + $0x9d4] ss:$8 sps:$4 sm:$0xff]   ;;  %v5716_v37 = vld [vmem:[%s6432_s29 + $0x8d0] ss:$8 sps:$4 sm:$0xff]  }
 0x172   : > { %3941 = vmatpush2.bf16.msra.mxu0 %v5649_v48  ;;  %v5724_v48 = vld [vmem:[%s6432_s29 + $0x8c4] ss:$8 sps:$4 sm:$0xff]  }
 0x173   : > { %3982 = vmatpush2.bf16.msra.mxu1 %v5652_v50  ;;  %3992 = vmatprep.subr.bf16.mxu0 %v5658_v52  ;;  %v5722_v50 = vld [vmem:[%s6432_s29 + $0x8c0] ss:$8 sps:$4 sm:$0xff]  }
 0x174   : > { %4033 = vmatprep.subr.bf16.mxu1 %v5661_v53  ;;  %v5725_v52 = vld [vmem:[%s6432_s29 + $0x9c0] ss:$8 sps:$4 sm:$0xff]   ;;  %v5730_v53 = vld [vmem:[%s6432_s29 + $0x8b4] ss:$8 sps:$4 sm:$0xff]  }
 0x175   : > { %v3698_v61 = vpop.f32.mrf.mxu0  ;;  %3943 = vmatmul.mubr.bf16.vlgmr.msra.gmra.mxu0 %v955_v49  ;;  %v5727_v49 = vld [vmem:[%s6432_s29 + $0x9c4] ss:$8 sps:$4 sm:$0xff]  }
 0x176   : > { %v3739_v62 = vpop.f32.mrf.mxu1  ;;  %3984 = vmatmul.mubr.bf16.vlgmr.msra.gmra.mxu1 %v971_v55  ;;  %3993 = vmatpush1.bf16.msra.mxu0 %v5656_v56  ;;  %v5728_v55 = vld [vmem:[%s6432_s29 + $0x8b0] ss:$8 sps:$4 sm:$0xff]  }
 0x177   : > { %v6774_v1 = vadd.f32 %v3739_v62, %v3698_v61  ;;  %4034 = vmatpush1.bf16.msra.mxu1 %v5659_v58  ;;  %v3700_v2 = vpop.f32.mrf.mxu0  ;;  %3994 = vmatprep.subr.bf16.mxu0 %v5664_v59  ;;  %v5731_v56 = vld [vmem:[%s6432_s29 + $0x9b0] ss:$8 sps:$4 sm:$0xff]   ;;  %v5736_v58 = vld [vmem:[%s6432_s29 + $0x8a4] ss:$8 sps:$4 sm:$0xff]   ;;  %v5737_v61 = vld [vmem:[%s6432_s29 + $0x9a0] ss:$8 sps:$4 sm:$0xff]  }
 0x178   : > { %v3741_v3 = vpop.f32.mrf.mxu1  ;;  %4035 = vmatprep.subr.bf16.mxu1 %v5667_v33  ;;  %4024 = vmatprep.mubr.bf16.mxu0 %v1011_v54  ;;  %v5733_v54 = vld [vmem:[%s6432_s29 + $0x9b4] ss:$8 sps:$4 sm:$0xff]   ;;  %v5739_v59 = vld [vmem:[%s6432_s29 + $0x9a4] ss:$8 sps:$4 sm:$0xff]   ;;  %v974_v33 = vcombine.high %v6746_v39, %v6746_v39  ;;  %v5740_v39 = vld [vmem:[%s6432_s29 + $0x890] ss:$8 sps:$4 sm:$0xff]  }
 0x179   : > { %v6778_v6 = vadd.f32 %v3741_v3, %v3700_v2  ;;  %4065 = vmatprep.mubr.bf16.mxu1 %v1021_v60  ;;  %v3702_v9 = vpop.f32.mrf.mxu0  ;;  %v5734_v60 = vld [vmem:[%s6432_s29 + $0x8a0] ss:$8 sps:$4 sm:$0xff]   ;;  %v5742_v62 = vld [vmem:[%s6432_s29 + $0x894] ss:$8 sps:$4 sm:$0xff]   ;;  %v5743_v2 = vld [vmem:[%s6432_s29 + $0x990] ss:$8 sps:$4 sm:$0xff]  }
 0x17a   : > { %v3743_v10 = vpop.f32.mrf.mxu1  ;;  %3995 = vmatpush1.bf16.msra.mxu0 %v5662_v63  ;;  %v5745_v63 = vld [vmem:[%s6432_s29 + $0x994] ss:$8 sps:$4 sm:$0xff]   ;;  %v5748_v3 = vld [vmem:[%s6432_s29 + $0x884] ss:$8 sps:$4 sm:$0xff]   ;;  %v5749_v9 = vld [vmem:[%s6432_s29 + $0x980] ss:$8 sps:$4 sm:$0xff]  }
 0x17b   : > { %4036 = vmatpush1.bf16.msra.mxu1 %v5665_v0  ;;  %v3703_v11 = vpop.f32.mrf.mxu0  ;;  %3996 = vmatprep.subr.bf16.mxu0 %v5670_v4  ;;  %v6831_v0 = vrot.slane %v974_v33, %v6508_v57  ;;  %v5751_v4 = vld [vmem:[%s6432_s29 + $0x984] ss:$8 sps:$4 sm:$0xff]   ;;  %v5754_v10 = vld [vmem:[%s6432_s29 + $0xa74] ss:$8 sps:$4 sm:$0xff]  }
 0x17c   : > { %v3744_v12 = vpop.f32.mrf.mxu1  ;;  %4037 = vmatprep.subr.bf16.mxu1 %v5673_v5  ;;  %v5757_v11 = vld [vmem:[%s6432_s29 + $0xb74] ss:$8 sps:$4 sm:$0xff]  }
 0x17d   : > { %v990_v5 = vcombine.high %v6831_v0, %v6831_v0  ;;  %v5752_v12 = vld [vmem:[%s6432_s29 + $0xa70] ss:$8 sps:$4 sm:$0xff]   ;;  %v5805_v33 = vld [vmem:[%s6432_s29 + $0xbf4] ss:$8 sps:$4 sm:$0xff]  }
 0x17e   : > { %3997 = vmatpush1.bf16.msra.mxu0 %v5668_v7  ;;  %v997_v7 = vrot.slane %v6753_v43, %v6508_v57  ;;  %v5760_v43 = vld [vmem:[%s6432_s29 + $0xa64] ss:$8 sps:$4 sm:$0xff]  }
 0x17f   : > { %4038 = vmatpush1.bf16.msra.mxu1 %v5671_v8  ;;  %3998 = vmatprep.subr.bf16.mxu0 %v5676_v13  ;;  %v5746_v8 = vld [vmem:[%s6432_s29 + $0x880] ss:$8 sps:$4 sm:$0xff]   ;;  %v5755_v13 = vld [vmem:[%s6432_s29 + $0xb70] ss:$8 sps:$4 sm:$0xff]  }
 0x180   : > { %4039 = vmatprep.subr.bf16.mxu1 %v5679_v15  ;;  %v1018_v15 = vrot.slane %v990_v5, %v6508_v57  ;;  %v5812_v5 = vld [vmem:[%s6432_s29 + $0xad0] ss:$8 sps:$4 sm:$0xff]  }
 0x182   : > { %3999 = vmatpush1.bf16.msra.mxu0 %v5674_v16  ;;  %v1019_v16 = vcombine.high %v997_v7, %v997_v7 }
 0x183   : > { %4040 = vmatpush1.bf16.msra.mxu1 %v5677_v17  ;;  %4000 = vmatprep.subr.bf16.mxu0 %v5682_v18  ;;  %v5763_v17 = vld [vmem:[%s6432_s29 + $0xb64] ss:$8 sps:$4 sm:$0xff]   ;;  %v1022_v18 = vcombine.high %v1018_v15, %v1018_v15 }
 0x184   : > { %4041 = vmatprep.subr.bf16.mxu1 %v5685_v19 }
 0x186   : > { %4001 = vmatpush1.bf16.msra.mxu0 %v5680_v20 }
 0x187   : > { %4042 = vmatpush1.bf16.msra.mxu1 %v5683_v21  ;;  %4002 = vmatprep.subr.bf16.mxu0 %v5688_v22  ;;  %v5758_v22 = vld [vmem:[%s6432_s29 + $0xa60] ss:$8 sps:$4 sm:$0xff]  }
 0x188   : > { %4043 = vmatprep.subr.bf16.mxu1 %v5691_v23  ;;  %v5761_v23 = vld [vmem:[%s6432_s29 + $0xb60] ss:$8 sps:$4 sm:$0xff]  }
 0x18a   : > { %4003 = vmatpush1.bf16.msra.mxu0 %v5686_v24 }
 0x18b   : > { %4044 = vmatpush1.bf16.msra.mxu1 %v5689_v25  ;;  %4004 = vmatprep.subr.bf16.mxu0 %v5694_v26  ;;  %v5766_v26 = vld [vmem:[%s6432_s29 + $0xa54] ss:$8 sps:$4 sm:$0xff]  }
 0x18c   : > { %4045 = vmatprep.subr.bf16.mxu1 %v5697_v27  ;;  %v5769_v27 = vld [vmem:[%s6432_s29 + $0xb54] ss:$8 sps:$4 sm:$0xff]  }
 0x18e   : > { %4005 = vmatpush1.bf16.msra.mxu0 %v5692_v28 }
 0x18f   : > { %4046 = vmatpush1.bf16.msra.mxu1 %v5695_v29  ;;  %4006 = vmatprep.subr.bf16.mxu0 %v5700_v30 }
 0x190   : > { %4047 = vmatprep.subr.bf16.mxu1 %v5703_v31 }
 0x192   : > { %4007 = vmatpush1.bf16.msra.mxu0 %v5698_v32  ;;  %v5764_v32 = vld [vmem:[%s6432_s29 + $0xa50] ss:$8 sps:$4 sm:$0xff]  }
 0x193   : > { %4048 = vmatpush1.bf16.msra.mxu1 %v5701_v34  ;;  %4008 = vmatprep.subr.bf16.mxu0 %v5706_v35  ;;  %v5767_v34 = vld [vmem:[%s6432_s29 + $0xb50] ss:$8 sps:$4 sm:$0xff]  }
 0x194   : > { %4049 = vmatprep.subr.bf16.mxu1 %v5709_v14 }
 0x196   : > { %4009 = vmatpush2.bf16.msra.mxu0 %v5704_v36  ;;  %v5775_v36 = vld [vmem:[%s6432_s29 + $0xb44] ss:$8 sps:$4 sm:$0xff]  }
 0x197   : > { %4050 = vmatpush2.bf16.msra.mxu1 %v5707_v38  ;;  %4010 = vmatprep.subr.bf16.mxu0 %v5712_v40  ;;  %v5770_v38 = vld [vmem:[%s6432_s29 + $0xa40] ss:$8 sps:$4 sm:$0xff]  }
 0x198   : > { %4051 = vmatprep.subr.bf16.mxu1 %v5715_v41  ;;  %v5773_v40 = vld [vmem:[%s6432_s29 + $0xb40] ss:$8 sps:$4 sm:$0xff]   ;;  %v5778_v41 = vld [vmem:[%s6432_s29 + $0xa34] ss:$8 sps:$4 sm:$0xff]  }
 0x19a   : > { %4011 = vmatpush2.bf16.msra.mxu0 %v5710_v42  ;;  %v5781_v42 = vld [vmem:[%s6432_s29 + $0xb34] ss:$8 sps:$4 sm:$0xff]  }
 0x19b   : > { %4052 = vmatpush2.bf16.msra.mxu1 %v5713_v44  ;;  %4012 = vmatprep.subr.bf16.mxu0 %v5718_v45  ;;  %v5776_v44 = vld [vmem:[%s6432_s29 + $0xa30] ss:$8 sps:$4 sm:$0xff]  }
 0x19c   : > { %4053 = vmatprep.subr.bf16.mxu1 %v5721_v46  ;;  %v5779_v45 = vld [vmem:[%s6432_s29 + $0xb30] ss:$8 sps:$4 sm:$0xff]   ;;  %v5784_v46 = vld [vmem:[%s6432_s29 + $0xa24] ss:$8 sps:$4 sm:$0xff]  }
 0x19e   : > { %4013 = vmatpush2.bf16.msra.mxu0 %v5716_v37  ;;  %v5787_v37 = vld [vmem:[%s6432_s29 + $0xb24] ss:$8 sps:$4 sm:$0xff]  }
 0x19f   : > { %4054 = vmatpush2.bf16.msra.mxu1 %v5719_v47  ;;  %4014 = vmatprep.subr.bf16.mxu0 %v5724_v48  ;;  %v5782_v47 = vld [vmem:[%s6432_s29 + $0xa20] ss:$8 sps:$4 sm:$0xff]  }
 0x1a0   : > { %4055 = vmatprep.subr.bf16.mxu1 %v5727_v49  ;;  %v5785_v48 = vld [vmem:[%s6432_s29 + $0xb20] ss:$8 sps:$4 sm:$0xff]   ;;  %v5790_v49 = vld [vmem:[%s6432_s29 + $0xa14] ss:$8 sps:$4 sm:$0xff]  }
 0x1a2   : > { %4015 = vmatpush2.bf16.msra.mxu0 %v5722_v50  ;;  %v5793_v50 = vld [vmem:[%s6432_s29 + $0xb14] ss:$8 sps:$4 sm:$0xff]  }
 0x1a3   : > { %4056 = vmatpush2.bf16.msra.mxu1 %v5725_v52  ;;  %4016 = vmatprep.subr.bf16.mxu0 %v5730_v53  ;;  %v5788_v52 = vld [vmem:[%s6432_s29 + $0xa10] ss:$8 sps:$4 sm:$0xff]  }
 0x1a4   : > { %4057 = vmatprep.subr.bf16.mxu1 %v5733_v54  ;;  %v5791_v53 = vld [vmem:[%s6432_s29 + $0xb10] ss:$8 sps:$4 sm:$0xff]   ;;  %v5796_v54 = vld [vmem:[%s6432_s29 + $0xa04] ss:$8 sps:$4 sm:$0xff]  }
 0x1a6   : > { %4017 = vmatpush2.bf16.msra.mxu0 %v5728_v55  ;;  %v5799_v55 = vld [vmem:[%s6432_s29 + $0xb04] ss:$8 sps:$4 sm:$0xff]  }
 0x1a7   : > { %4058 = vmatpush2.bf16.msra.mxu1 %v5731_v56  ;;  %4018 = vmatprep.subr.bf16.mxu0 %v5736_v58  ;;  %v5794_v56 = vld [vmem:[%s6432_s29 + $0xa00] ss:$8 sps:$4 sm:$0xff]  }
 0x1a8   : > { %4059 = vmatprep.subr.bf16.mxu1 %v5739_v59  ;;  %v5797_v58 = vld [vmem:[%s6432_s29 + $0xb00] ss:$8 sps:$4 sm:$0xff]   ;;  %v5802_v59 = vld [vmem:[%s6432_s29 + $0xaf4] ss:$8 sps:$4 sm:$0xff]  }
 0x1aa   : > { %4019 = vmatpush2.bf16.msra.mxu0 %v5734_v60  ;;  %v5800_v60 = vld [vmem:[%s6432_s29 + $0xaf0] ss:$8 sps:$4 sm:$0xff]  }
 0x1ab   : > { %4060 = vmatpush2.bf16.msra.mxu1 %v5737_v61  ;;  %4020 = vmatprep.subr.bf16.mxu0 %v5742_v62  ;;  %v5803_v61 = vld [vmem:[%s6432_s29 + $0xbf0] ss:$8 sps:$4 sm:$0xff]   ;;  %v5808_v62 = vld [vmem:[%s6432_s29 + $0xae4] ss:$8 sps:$4 sm:$0xff]  }
 0x1ac   : > { %4061 = vmatprep.subr.bf16.mxu1 %v5745_v63  ;;  %v5811_v63 = vld [vmem:[%s6432_s29 + $0xbe4] ss:$8 sps:$4 sm:$0xff]  }
 0x1ae   : > { %4021 = vmatpush2.bf16.msra.mxu0 %v5740_v39  ;;  %v5806_v39 = vld [vmem:[%s6432_s29 + $0xae0] ss:$8 sps:$4 sm:$0xff]  }
 0x1af   : > { %4062 = vmatpush2.bf16.msra.mxu1 %v5743_v2  ;;  %4022 = vmatprep.subr.bf16.mxu0 %v5748_v3  ;;  %v5809_v2 = vld [vmem:[%s6432_s29 + $0xbe0] ss:$8 sps:$4 sm:$0xff]   ;;  %v5814_v3 = vld [vmem:[%s6432_s29 + $0xad4] ss:$8 sps:$4 sm:$0xff]  }
 0x1b0   : > { %4063 = vmatprep.subr.bf16.mxu1 %v5751_v4  ;;  %v5817_v4 = vld [vmem:[%s6432_s29 + $0xbd4] ss:$8 sps:$4 sm:$0xff]  }
 0x1b2   : > { %4023 = vmatpush2.bf16.msra.mxu0 %v5746_v8  ;;  %v5820_v8 = vld [vmem:[%s6432_s29 + $0xac4] ss:$8 sps:$4 sm:$0xff]  }
 0x1b3   : > { %4064 = vmatpush2.bf16.msra.mxu1 %v5749_v9  ;;  %4074 = vmatprep.subr.bf16.mxu0 %v5754_v10  ;;  %v5823_v9 = vld [vmem:[%s6432_s29 + $0xbc4] ss:$8 sps:$4 sm:$0xff]   ;;  %v5818_v10 = vld [vmem:[%s6432_s29 + $0xac0] ss:$8 sps:$4 sm:$0xff]  }
 0x1b4   : > { %4115 = vmatprep.subr.bf16.mxu1 %v5757_v11  ;;  %v5821_v11 = vld [vmem:[%s6432_s29 + $0xbc0] ss:$8 sps:$4 sm:$0xff]  }
 0x1b5   : > { %v3780_v19 = vpop.f32.mrf.mxu0  ;;  %4025 = vmatmul.mubr.bf16.vlgmr.msra.gmra.mxu0 %v997_v7  ;;  %v5815_v7 = vld [vmem:[%s6432_s29 + $0xbd0] ss:$8 sps:$4 sm:$0xff]  }
 0x1b6   : > { %v3821_v20 = vpop.f32.mrf.mxu1  ;;  %4066 = vmatmul.mubr.bf16.vlgmr.msra.gmra.mxu1 %v1019_v16  ;;  %v3781_v21 = vadd.f32 %v3780_v19, %v6774_v1  ;;  %4075 = vmatpush1.bf16.msra.mxu0 %v5752_v12  ;;  %v5826_v12 = vld [vmem:[%s6432_s29 + $0xab4] ss:$8 sps:$4 sm:$0xff]   ;;  %v5827_v16 = vld [vmem:[%s6432_s29 + $0xbb0] ss:$8 sps:$4 sm:$0xff]   ;;  %v5830_v19 = vld [vmem:[%s6432_s29 + $0xaa0] ss:$8 sps:$4 sm:$0xff]  }
 0x1b7   : > { %4116 = vmatpush1.bf16.msra.mxu1 %v5755_v13  ;;  %v3782_v24 = vpop.f32.mrf.mxu0  ;;  %4076 = vmatprep.subr.bf16.mxu0 %v5760_v43  ;;  %v5829_v13 = vld [vmem:[%s6432_s29 + $0xbb4] ss:$8 sps:$4 sm:$0xff]   ;;  %v5832_v43 = vld [vmem:[%s6432_s29 + $0xaa4] ss:$8 sps:$4 sm:$0xff]  }
 0x1b8   : > { %v3823_v25 = vpop.f32.mrf.mxu1  ;;  %4117 = vmatprep.subr.bf16.mxu1 %v5763_v17  ;;  %v6855_v28 = vadd.f32 %v3821_v20, %v3781_v21  ;;  %v3783_v29 = vadd.f32 %v3782_v24, %v6778_v6  ;;  %4106 = vmatprep.mubr.bf16.mxu0 %v1018_v15  ;;  %v5772_v6 = vld [vmem:[%s6432_s29 + $0xa44] ss:$8 sps:$4 sm:$0xff]   ;;  %v5824_v15 = vld [vmem:[%s6432_s29 + $0xab0] ss:$8 sps:$4 sm:$0xff]   ;;  %v5833_v20 = vld [vmem:[%s6432_s29 + $0xba0] ss:$8 sps:$4 sm:$0xff]  }
 0x1b9   : > { %4147 = vmatprep.mubr.bf16.mxu1 %v1022_v18  ;;  %v3784_v1 = vpop.f32.mrf.mxu0  ;;  %v5835_v17 = vld [vmem:[%s6432_s29 + $0xba4] ss:$8 sps:$4 sm:$0xff]   ;;  %v6905_v18 = vld [vmem:[%s6451_s20 + $0x18] sm:$0xff] }
 0x1ba   : > { %v3825_v30 = vpop.f32.mrf.mxu1  ;;  %v6858_v31 = vadd.f32 %v3823_v25, %v3783_v29  ;;  %4077 = vmatpush1.bf16.msra.mxu0 %v5758_v22  ;;  %v5838_v21 = vld [vmem:[%s6432_s29 + $0xa94] ss:$8 sps:$4 sm:$0xff]   ;;  %v5836_v24 = vld [vmem:[%s6432_s29 + $0xa90] ss:$8 sps:$4 sm:$0xff]   ;;  %v1004_v1 = vrot.slane %v6831_v0, %v6508_v57  ;;  %v5857_v0 = vld [vmem:[%s6432_s29 + $0xc64] ss:$8 sps:$4 sm:$0xff]  }
 0x1bb   : > { %4118 = vmatpush1.bf16.msra.mxu1 %v5761_v23  ;;  %v3785_v35 = vpop.f32.mrf.mxu0  ;;  %4078 = vmatprep.subr.bf16.mxu0 %v5766_v26  ;;  %v5841_v22 = vld [vmem:[%s6432_s29 + $0xb94] ss:$8 sps:$4 sm:$0xff]   ;;  %v6913_v23 = vrot.slane %v6905_v18, %v6508_v57  ;;  %v5839_v25 = vld [vmem:[%s6432_s29 + $0xb90] ss:$8 sps:$4 sm:$0xff]   ;;  %v5844_v26 = vld [vmem:[%s6432_s29 + $0xa84] ss:$8 sps:$4 sm:$0xff]  }
 0x1bc   : > { %v3826_v14 = vpop.f32.mrf.mxu1  ;;  %4119 = vmatprep.subr.bf16.mxu1 %v5769_v27  ;;  %v5847_v27 = vld [vmem:[%s6432_s29 + $0xb84] ss:$8 sps:$4 sm:$0xff]   ;;  %v5842_v30 = vld [vmem:[%s6432_s29 + $0xa80] ss:$8 sps:$4 sm:$0xff]   ;;  %v5854_v35 = vld [vmem:[%s6432_s29 + $0xd74] ss:$8 sps:$4 sm:$0xff]  }
 0x1bd   : > { %v1038_v29 = vcombine.high %v6913_v23, %v6913_v23 }
 0x1be   : > { %4079 = vmatpush1.bf16.msra.mxu0 %v5764_v32  ;;  %v5845_v32 = vld [vmem:[%s6432_s29 + $0xb80] ss:$8 sps:$4 sm:$0xff]  }
 0x1bf   : > { %4120 = vmatpush1.bf16.msra.mxu1 %v5767_v34  ;;  %4080 = vmatprep.subr.bf16.mxu0 %v5772_v6  ;;  %v5851_v34 = vld [vmem:[%s6432_s29 + $0xc74] ss:$8 sps:$4 sm:$0xff]   ;;  %v1060_v14 = vrot.slane %v1038_v29, %v6508_v57  ;;  %v1020_v6 = vcombine.high %v1004_v1, %v1004_v1 }
 0x1c0   : > { %4121 = vmatprep.subr.bf16.mxu1 %v5775_v36  ;;  %v5849_v36 = vld [vmem:[%s6432_s29 + $0xc70] ss:$8 sps:$4 sm:$0xff]   ;;  %v5914_v29 = vld [vmem:[%s6432_s29 + $0xdd4] ss:$8 sps:$4 sm:$0xff]  }
 0x1c2   : > { %4081 = vmatpush1.bf16.msra.mxu0 %v5770_v38  ;;  %v5852_v38 = vld [vmem:[%s6432_s29 + $0xd70] ss:$8 sps:$4 sm:$0xff]  }
 0x1c3   : > { %4122 = vmatpush1.bf16.msra.mxu1 %v5773_v40  ;;  %4082 = vmatprep.subr.bf16.mxu0 %v5778_v41  ;;  %v5860_v40 = vld [vmem:[%s6432_s29 + $0xd64] ss:$8 sps:$4 sm:$0xff]   ;;  %v1070_v41 = vcombine.high %v1060_v14, %v1060_v14 }
 0x1c4   : > { %4123 = vmatprep.subr.bf16.mxu1 %v5781_v42 }
 0x1c6   : > { %4083 = vmatpush1.bf16.msra.mxu0 %v5776_v44 }
 0x1c7   : > { %4124 = vmatpush1.bf16.msra.mxu1 %v5779_v45  ;;  %4084 = vmatprep.subr.bf16.mxu0 %v5784_v46  ;;  %v5855_v46 = vld [vmem:[%s6432_s29 + $0xc60] ss:$8 sps:$4 sm:$0xff]  }
 0x1c8   : > { %4125 = vmatprep.subr.bf16.mxu1 %v5787_v37  ;;  %v5858_v37 = vld [vmem:[%s6432_s29 + $0xd60] ss:$8 sps:$4 sm:$0xff]  }
 0x1ca   : > { %4085 = vmatpush1.bf16.msra.mxu0 %v5782_v47 }
 0x1cb   : > { %4126 = vmatpush1.bf16.msra.mxu1 %v5785_v48  ;;  %4086 = vmatprep.subr.bf16.mxu0 %v5790_v49  ;;  %v5863_v49 = vld [vmem:[%s6432_s29 + $0xc54] ss:$8 sps:$4 sm:$0xff]  }
 0x1cc   : > { %4127 = vmatprep.subr.bf16.mxu1 %v5793_v50  ;;  %v5866_v50 = vld [vmem:[%s6432_s29 + $0xd54] ss:$8 sps:$4 sm:$0xff]  }
 0x1ce   : > { %4087 = vmatpush1.bf16.msra.mxu0 %v5788_v52 }
 0x1cf   : > { %4128 = vmatpush1.bf16.msra.mxu1 %v5791_v53  ;;  %4088 = vmatprep.subr.bf16.mxu0 %v5796_v54 }
 0x1d0   : > { %4129 = vmatprep.subr.bf16.mxu1 %v5799_v55 }
 0x1d2   : > { %4089 = vmatpush1.bf16.msra.mxu0 %v5794_v56  ;;  %v5861_v56 = vld [vmem:[%s6432_s29 + $0xc50] ss:$8 sps:$4 sm:$0xff]  }
 0x1d3   : > { %4130 = vmatpush1.bf16.msra.mxu1 %v5797_v58  ;;  %4090 = vmatprep.subr.bf16.mxu0 %v5802_v59  ;;  %v5864_v58 = vld [vmem:[%s6432_s29 + $0xd50] ss:$8 sps:$4 sm:$0xff]  }
 0x1d4   : > { %4131 = vmatprep.subr.bf16.mxu1 %v5805_v33 }
 0x1d6   : > { %4091 = vmatpush2.bf16.msra.mxu0 %v5800_v60  ;;  %v5872_v60 = vld [vmem:[%s6432_s29 + $0xd44] ss:$8 sps:$4 sm:$0xff]  }
 0x1d7   : > { %4132 = vmatpush2.bf16.msra.mxu1 %v5803_v61  ;;  %4092 = vmatprep.subr.bf16.mxu0 %v5808_v62  ;;  %v5867_v61 = vld [vmem:[%s6432_s29 + $0xc40] ss:$8 sps:$4 sm:$0xff]  }
 0x1d8   : > { %4133 = vmatprep.subr.bf16.mxu1 %v5811_v63  ;;  %v5870_v62 = vld [vmem:[%s6432_s29 + $0xd40] ss:$8 sps:$4 sm:$0xff]   ;;  %v5875_v63 = vld [vmem:[%s6432_s29 + $0xc34] ss:$8 sps:$4 sm:$0xff]  }
 0x1da   : > { %4093 = vmatpush2.bf16.msra.mxu0 %v5806_v39  ;;  %v5878_v39 = vld [vmem:[%s6432_s29 + $0xd34] ss:$8 sps:$4 sm:$0xff]  }
 0x1db   : > { %4134 = vmatpush2.bf16.msra.mxu1 %v5809_v2  ;;  %4094 = vmatprep.subr.bf16.mxu0 %v5814_v3  ;;  %v5873_v2 = vld [vmem:[%s6432_s29 + $0xc30] ss:$8 sps:$4 sm:$0xff]  }
 0x1dc   : > { %4135 = vmatprep.subr.bf16.mxu1 %v5817_v4  ;;  %v5876_v3 = vld [vmem:[%s6432_s29 + $0xd30] ss:$8 sps:$4 sm:$0xff]   ;;  %v5881_v4 = vld [vmem:[%s6432_s29 + $0xc24] ss:$8 sps:$4 sm:$0xff]  }
 0x1de   : > { %4095 = vmatpush2.bf16.msra.mxu0 %v5812_v5  ;;  %v5884_v5 = vld [vmem:[%s6432_s29 + $0xd24] ss:$8 sps:$4 sm:$0xff]  }
 0x1df   : > { %4136 = vmatpush2.bf16.msra.mxu1 %v5815_v7  ;;  %4096 = vmatprep.subr.bf16.mxu0 %v5820_v8  ;;  %v5879_v7 = vld [vmem:[%s6432_s29 + $0xc20] ss:$8 sps:$4 sm:$0xff]  }
 0x1e0   : > { %4137 = vmatprep.subr.bf16.mxu1 %v5823_v9  ;;  %v5882_v8 = vld [vmem:[%s6432_s29 + $0xd20] ss:$8 sps:$4 sm:$0xff]   ;;  %v5887_v9 = vld [vmem:[%s6432_s29 + $0xc14] ss:$8 sps:$4 sm:$0xff]  }
 0x1e2   : > { %4097 = vmatpush2.bf16.msra.mxu0 %v5818_v10  ;;  %v5890_v10 = vld [vmem:[%s6432_s29 + $0xd14] ss:$8 sps:$4 sm:$0xff]  }
 0x1e3   : > { %4138 = vmatpush2.bf16.msra.mxu1 %v5821_v11  ;;  %4098 = vmatprep.subr.bf16.mxu0 %v5826_v12  ;;  %v5885_v11 = vld [vmem:[%s6432_s29 + $0xc10] ss:$8 sps:$4 sm:$0xff]  }
 0x1e4   : > { %4139 = vmatprep.subr.bf16.mxu1 %v5829_v13  ;;  %v5888_v12 = vld [vmem:[%s6432_s29 + $0xd10] ss:$8 sps:$4 sm:$0xff]   ;;  %v5893_v13 = vld [vmem:[%s6432_s29 + $0xc04] ss:$8 sps:$4 sm:$0xff]  }
 0x1e6   : > { %4099 = vmatpush2.bf16.msra.mxu0 %v5824_v15  ;;  %v5896_v15 = vld [vmem:[%s6432_s29 + $0xd04] ss:$8 sps:$4 sm:$0xff]  }
 0x1e7   : > { %4140 = vmatpush2.bf16.msra.mxu1 %v5827_v16  ;;  %4100 = vmatprep.subr.bf16.mxu0 %v5832_v43  ;;  %v5891_v16 = vld [vmem:[%s6432_s29 + $0xc00] ss:$8 sps:$4 sm:$0xff]  }
 0x1e8   : > { %4141 = vmatprep.subr.bf16.mxu1 %v5835_v17  ;;  %v5894_v43 = vld [vmem:[%s6432_s29 + $0xd00] ss:$8 sps:$4 sm:$0xff]   ;;  %v5899_v17 = vld [vmem:[%s6432_s29 + $0xcf4] ss:$8 sps:$4 sm:$0xff]  }
 0x1ea   : > { %4101 = vmatpush2.bf16.msra.mxu0 %v5830_v19  ;;  %v5902_v19 = vld [vmem:[%s6432_s29 + $0xdf4] ss:$8 sps:$4 sm:$0xff]  }
 0x1eb   : > { %4142 = vmatpush2.bf16.msra.mxu1 %v5833_v20  ;;  %4102 = vmatprep.subr.bf16.mxu0 %v5838_v21  ;;  %v5897_v20 = vld [vmem:[%s6432_s29 + $0xcf0] ss:$8 sps:$4 sm:$0xff]  }
 0x1ec   : > { %4143 = vmatprep.subr.bf16.mxu1 %v5841_v22  ;;  %v5900_v21 = vld [vmem:[%s6432_s29 + $0xdf0] ss:$8 sps:$4 sm:$0xff]   ;;  %v5905_v22 = vld [vmem:[%s6432_s29 + $0xce4] ss:$8 sps:$4 sm:$0xff]  }
 0x1ee   : > { %4103 = vmatpush2.bf16.msra.mxu0 %v5836_v24  ;;  %v5908_v24 = vld [vmem:[%s6432_s29 + $0xde4] ss:$8 sps:$4 sm:$0xff]  }
 0x1ef   : > { %4144 = vmatpush2.bf16.msra.mxu1 %v5839_v25  ;;  %4104 = vmatprep.subr.bf16.mxu0 %v5844_v26  ;;  %v5903_v25 = vld [vmem:[%s6432_s29 + $0xce0] ss:$8 sps:$4 sm:$0xff]  }
 0x1f0   : > { %4145 = vmatprep.subr.bf16.mxu1 %v5847_v27  ;;  %v5906_v26 = vld [vmem:[%s6432_s29 + $0xde0] ss:$8 sps:$4 sm:$0xff]   ;;  %v5911_v27 = vld [vmem:[%s6432_s29 + $0xcd4] ss:$8 sps:$4 sm:$0xff]  }
 0x1f2   : > { %4105 = vmatpush2.bf16.msra.mxu0 %v5842_v30  ;;  %v5912_v30 = vld [vmem:[%s6432_s29 + $0xdd0] ss:$8 sps:$4 sm:$0xff]  }
 0x1f3   : > { %4146 = vmatpush2.bf16.msra.mxu1 %v5845_v32  ;;  %4156 = vmatprep.subr.bf16.mxu0 %v5851_v34  ;;  %v5917_v32 = vld [vmem:[%s6432_s29 + $0xcc4] ss:$8 sps:$4 sm:$0xff]  }
 0x1f4   : > { %4197 = vmatprep.subr.bf16.mxu1 %v5854_v35  ;;  %v5920_v34 = vld [vmem:[%s6432_s29 + $0xdc4] ss:$8 sps:$4 sm:$0xff]   ;;  %v5915_v35 = vld [vmem:[%s6432_s29 + $0xcc0] ss:$8 sps:$4 sm:$0xff]  }
 0x1f5   : > { %v3862_v42 = vpop.f32.mrf.mxu0  ;;  %4107 = vmatmul.mubr.bf16.vlgmr.msra.gmra.mxu0 %v1004_v1  ;;  %v5909_v1 = vld [vmem:[%s6432_s29 + $0xcd0] ss:$8 sps:$4 sm:$0xff]  }
 0x1f6   : > { %v3903_v44 = vpop.f32.mrf.mxu1  ;;  %4148 = vmatmul.mubr.bf16.vlgmr.msra.gmra.mxu1 %v1020_v6  ;;  %v3863_v45 = vadd.f32 %v3862_v42, %v6855_v28  ;;  %4157 = vmatpush1.bf16.msra.mxu0 %v5849_v36  ;;  %v5923_v6 = vld [vmem:[%s6432_s29 + $0xcb4] ss:$8 sps:$4 sm:$0xff]   ;;  %v1023_v42 = vcombine.high %v6905_v18, %v6905_v18  ;;  %v5933_v18 = vld [vmem:[%s6432_s29 + $0xc90] ss:$8 sps:$4 sm:$0xff]  }
 0x1f7   : > { %4198 = vmatpush1.bf16.msra.mxu1 %v5852_v38  ;;  %v3864_v47 = vpop.f32.mrf.mxu0  ;;  %4158 = vmatprep.subr.bf16.mxu0 %v5857_v0  ;;  %v5926_v36 = vld [vmem:[%s6432_s29 + $0xdb4] ss:$8 sps:$4 sm:$0xff]   ;;  %v5921_v38 = vld [vmem:[%s6432_s29 + $0xcb0] ss:$8 sps:$4 sm:$0xff]  }
 0x1f8   : > { %v3905_v48 = vpop.f32.mrf.mxu1  ;;  %4199 = vmatprep.subr.bf16.mxu1 %v5860_v40  ;;  %v6937_v52 = vadd.f32 %v3903_v44, %v3863_v45  ;;  %v3865_v53 = vadd.f32 %v3864_v47, %v6858_v31  ;;  %4188 = vmatprep.mubr.bf16.mxu0 %v1060_v14  ;;  %v5869_v31 = vld [vmem:[%s6432_s29 + $0xc44] ss:$8 sps:$4 sm:$0xff]   ;;  %v5918_v14 = vld [vmem:[%s6432_s29 + $0xdc0] ss:$8 sps:$4 sm:$0xff]   ;;  %v5924_v0 = vld [vmem:[%s6432_s29 + $0xdb0] ss:$8 sps:$4 sm:$0xff]   ;;  %v6993_v47 = vrot.slane %v1023_v42, %v6508_v57 }
 0x1f9   : > { %4229 = vmatprep.mubr.bf16.mxu1 %v1070_v41  ;;  %v3866_v28 = vpop.f32.mrf.mxu0  ;;  %v5929_v40 = vld [vmem:[%s6432_s29 + $0xca4] ss:$8 sps:$4 sm:$0xff]   ;;  %v5927_v44 = vld [vmem:[%s6432_s29 + $0xca0] ss:$8 sps:$4 sm:$0xff]   ;;  %v5998_v42 = vld [vmem:[%s6432_s29 + $0xff4] ss:$8 sps:$4 sm:$0xff]  }
 0x1fa   : > { %v3907_v54 = vpop.f32.mrf.mxu1  ;;  %v6940_v55 = vadd.f32 %v3905_v48, %v3865_v53  ;;  %4159 = vmatpush1.bf16.msra.mxu0 %v5855_v46  ;;  %v5932_v41 = vld [vmem:[%s6432_s29 + $0xda4] ss:$8 sps:$4 sm:$0xff]   ;;  %v5930_v45 = vld [vmem:[%s6432_s29 + $0xda0] ss:$8 sps:$4 sm:$0xff]   ;;  %v5935_v46 = vld [vmem:[%s6432_s29 + $0xc94] ss:$8 sps:$4 sm:$0xff]   ;;  %v1039_v53 = vcombine.high %v6993_v47, %v6993_v47  ;;  %v1046_v28 = vrot.slane %v6913_v23, %v6508_v57 }
 0x1fb   : > { %4200 = vmatpush1.bf16.msra.mxu1 %v5858_v37  ;;  %v3867_v59 = vpop.f32.mrf.mxu0  ;;  %4160 = vmatprep.subr.bf16.mxu0 %v5863_v49  ;;  %v5938_v37 = vld [vmem:[%s6432_s29 + $0xd94] ss:$8 sps:$4 sm:$0xff]   ;;  %v5936_v48 = vld [vmem:[%s6432_s29 + $0xd90] ss:$8 sps:$4 sm:$0xff]   ;;  %v5941_v49 = vld [vmem:[%s6432_s29 + $0xc84] ss:$8 sps:$4 sm:$0xff]  }
 0x1fc   : > { %v3908_v33 = vpop.f32.mrf.mxu1  ;;  %4201 = vmatprep.subr.bf16.mxu1 %v5866_v50  ;;  %v5944_v50 = vld [vmem:[%s6432_s29 + $0xd84] ss:$8 sps:$4 sm:$0xff]   ;;  %v5939_v54 = vld [vmem:[%s6432_s29 + $0xc80] ss:$8 sps:$4 sm:$0xff]   ;;  %v5950_v59 = vld [vmem:[%s6432_s29 + $0xf74] ss:$8 sps:$4 sm:$0xff]  }
 0x1fd   : > { %v1067_v33 = vrot.slane %v1039_v53, %v6508_v57  ;;  %v5953_v23 = vld [vmem:[%s6432_s29 + $0xe64] ss:$8 sps:$4 sm:$0xff]   ;;  %v6005_v53 = vld [vmem:[%s6432_s29 + $0xed0] ss:$8 sps:$4 sm:$0xff]  }
 0x1fe   : > { %4161 = vmatpush1.bf16.msra.mxu0 %v5861_v56  ;;  %v5942_v56 = vld [vmem:[%s6432_s29 + $0xd80] ss:$8 sps:$4 sm:$0xff]  }
 0x1ff   : > { %4202 = vmatpush1.bf16.msra.mxu1 %v5864_v58  ;;  %4162 = vmatprep.subr.bf16.mxu0 %v5869_v31  ;;  %v5947_v58 = vld [vmem:[%s6432_s29 + $0xe74] ss:$8 sps:$4 sm:$0xff]   ;;  %v1068_v31 = vcombine.high %v1046_v28, %v1046_v28 }
 0x200   : > { %4203 = vmatprep.subr.bf16.mxu1 %v5872_v60  ;;  %v5945_v60 = vld [vmem:[%s6432_s29 + $0xe70] ss:$8 sps:$4 sm:$0xff]  }
 0x202   : > { %4163 = vmatpush1.bf16.msra.mxu0 %v5867_v61  ;;  %v5948_v61 = vld [vmem:[%s6432_s29 + $0xf70] ss:$8 sps:$4 sm:$0xff]  }
 0x203   : > { %4204 = vmatpush1.bf16.msra.mxu1 %v5870_v62  ;;  %4164 = vmatprep.subr.bf16.mxu0 %v5875_v63  ;;  %v5956_v62 = vld [vmem:[%s6432_s29 + $0xf64] ss:$8 sps:$4 sm:$0xff]   ;;  %v1071_v63 = vcombine.high %v1067_v33, %v1067_v33 }
 0x204   : > { %4205 = vmatprep.subr.bf16.mxu1 %v5878_v39 }
 0x206   : > { %4165 = vmatpush1.bf16.msra.mxu0 %v5873_v2 }
 0x207   : > { %4206 = vmatpush1.bf16.msra.mxu1 %v5876_v3  ;;  %4166 = vmatprep.subr.bf16.mxu0 %v5881_v4  ;;  %v5951_v4 = vld [vmem:[%s6432_s29 + $0xe60] ss:$8 sps:$4 sm:$0xff]  }
 0x208   : > { %4207 = vmatprep.subr.bf16.mxu1 %v5884_v5  ;;  %v5954_v5 = vld [vmem:[%s6432_s29 + $0xf60] ss:$8 sps:$4 sm:$0xff]  }
 0x20a   : > { %4167 = vmatpush1.bf16.msra.mxu0 %v5879_v7 }
 0x20b   : > { %4208 = vmatpush1.bf16.msra.mxu1 %v5882_v8  ;;  %4168 = vmatprep.subr.bf16.mxu0 %v5887_v9  ;;  %v5959_v9 = vld [vmem:[%s6432_s29 + $0xe54] ss:$8 sps:$4 sm:$0xff]  }
 0x20c   : > { %4209 = vmatprep.subr.bf16.mxu1 %v5890_v10  ;;  %v5962_v10 = vld [vmem:[%s6432_s29 + $0xf54] ss:$8 sps:$4 sm:$0xff]  }
 0x20e   : > { %4169 = vmatpush1.bf16.msra.mxu0 %v5885_v11 }
 0x20f   : > { %4210 = vmatpush1.bf16.msra.mxu1 %v5888_v12  ;;  %4170 = vmatprep.subr.bf16.mxu0 %v5893_v13 }
 0x210   : > { %4211 = vmatprep.subr.bf16.mxu1 %v5896_v15 }
 0x212   : > { %4171 = vmatpush1.bf16.msra.mxu0 %v5891_v16  ;;  %v5957_v16 = vld [vmem:[%s6432_s29 + $0xe50] ss:$8 sps:$4 sm:$0xff]  }
 0x213   : > { %4212 = vmatpush1.bf16.msra.mxu1 %v5894_v43  ;;  %4172 = vmatprep.subr.bf16.mxu0 %v5899_v17  ;;  %v5960_v43 = vld [vmem:[%s6432_s29 + $0xf50] ss:$8 sps:$4 sm:$0xff]  }
 0x214   : > { %4213 = vmatprep.subr.bf16.mxu1 %v5902_v19 }
 0x216   : > { %4173 = vmatpush2.bf16.msra.mxu0 %v5897_v20  ;;  %v5968_v20 = vld [vmem:[%s6432_s29 + $0xf44] ss:$8 sps:$4 sm:$0xff]  }
 0x217   : > { %4214 = vmatpush2.bf16.msra.mxu1 %v5900_v21  ;;  %4174 = vmatprep.subr.bf16.mxu0 %v5905_v22  ;;  %v5963_v21 = vld [vmem:[%s6432_s29 + $0xe40] ss:$8 sps:$4 sm:$0xff]  }
 0x218   : > { %4215 = vmatprep.subr.bf16.mxu1 %v5908_v24  ;;  %v5966_v22 = vld [vmem:[%s6432_s29 + $0xf40] ss:$8 sps:$4 sm:$0xff]   ;;  %v5971_v24 = vld [vmem:[%s6432_s29 + $0xe34] ss:$8 sps:$4 sm:$0xff]  }
 0x21a   : > { %4175 = vmatpush2.bf16.msra.mxu0 %v5903_v25  ;;  %v5974_v25 = vld [vmem:[%s6432_s29 + $0xf34] ss:$8 sps:$4 sm:$0xff]  }
 0x21b   : > { %4216 = vmatpush2.bf16.msra.mxu1 %v5906_v26  ;;  %4176 = vmatprep.subr.bf16.mxu0 %v5911_v27  ;;  %v5969_v26 = vld [vmem:[%s6432_s29 + $0xe30] ss:$8 sps:$4 sm:$0xff]  }
 0x21c   : > { %4217 = vmatprep.subr.bf16.mxu1 %v5914_v29  ;;  %v5972_v27 = vld [vmem:[%s6432_s29 + $0xf30] ss:$8 sps:$4 sm:$0xff]   ;;  %v5977_v29 = vld [vmem:[%s6432_s29 + $0xe24] ss:$8 sps:$4 sm:$0xff]  }
 0x21e   : > { %4177 = vmatpush2.bf16.msra.mxu0 %v5909_v1  ;;  %v5980_v1 = vld [vmem:[%s6432_s29 + $0xf24] ss:$8 sps:$4 sm:$0xff]  }
 0x21f   : > { %4218 = vmatpush2.bf16.msra.mxu1 %v5912_v30  ;;  %4178 = vmatprep.subr.bf16.mxu0 %v5917_v32  ;;  %v5975_v30 = vld [vmem:[%s6432_s29 + $0xe20] ss:$8 sps:$4 sm:$0xff]  }
 0x220   : > { %4219 = vmatprep.subr.bf16.mxu1 %v5920_v34  ;;  %v5978_v32 = vld [vmem:[%s6432_s29 + $0xf20] ss:$8 sps:$4 sm:$0xff]   ;;  %v5983_v34 = vld [vmem:[%s6432_s29 + $0xe14] ss:$8 sps:$4 sm:$0xff]  }
 0x222   : > { %4179 = vmatpush2.bf16.msra.mxu0 %v5915_v35  ;;  %v5986_v35 = vld [vmem:[%s6432_s29 + $0xf14] ss:$8 sps:$4 sm:$0xff]  }
 0x223   : > { %4220 = vmatpush2.bf16.msra.mxu1 %v5918_v14  ;;  %4180 = vmatprep.subr.bf16.mxu0 %v5923_v6  ;;  %v5981_v14 = vld [vmem:[%s6432_s29 + $0xe10] ss:$8 sps:$4 sm:$0xff]  }
 0x224   : > { %4221 = vmatprep.subr.bf16.mxu1 %v5926_v36  ;;  %v5984_v6 = vld [vmem:[%s6432_s29 + $0xf10] ss:$8 sps:$4 sm:$0xff]   ;;  %v5989_v36 = vld [vmem:[%s6432_s29 + $0xe04] ss:$8 sps:$4 sm:$0xff]  }
 0x226   : > { %4181 = vmatpush2.bf16.msra.mxu0 %v5921_v38  ;;  %v5992_v38 = vld [vmem:[%s6432_s29 + $0xf04] ss:$8 sps:$4 sm:$0xff]  }
 0x227   : > { %4222 = vmatpush2.bf16.msra.mxu1 %v5924_v0  ;;  %4182 = vmatprep.subr.bf16.mxu0 %v5929_v40  ;;  %v5987_v0 = vld [vmem:[%s6432_s29 + $0xe00] ss:$8 sps:$4 sm:$0xff]  }
 0x228   : > { %4223 = vmatprep.subr.bf16.mxu1 %v5932_v41  ;;  %v5990_v40 = vld [vmem:[%s6432_s29 + $0xf00] ss:$8 sps:$4 sm:$0xff]   ;;  %v5995_v41 = vld [vmem:[%s6432_s29 + $0xef4] ss:$8 sps:$4 sm:$0xff]  }
 0x22a   : > { %4183 = vmatpush2.bf16.msra.mxu0 %v5927_v44  ;;  %v5993_v44 = vld [vmem:[%s6432_s29 + $0xef0] ss:$8 sps:$4 sm:$0xff]  }
 0x22b   : > { %4224 = vmatpush2.bf16.msra.mxu1 %v5930_v45  ;;  %4184 = vmatprep.subr.bf16.mxu0 %v5935_v46  ;;  %v5996_v45 = vld [vmem:[%s6432_s29 + $0xff0] ss:$8 sps:$4 sm:$0xff]   ;;  %v6001_v46 = vld [vmem:[%s6432_s29 + $0xee4] ss:$8 sps:$4 sm:$0xff]  }
 0x22c   : > { %4225 = vmatprep.subr.bf16.mxu1 %v5938_v37  ;;  %v6004_v37 = vld [vmem:[%s6432_s29 + $0xfe4] ss:$8 sps:$4 sm:$0xff]  }
 0x22e   : > { %4185 = vmatpush2.bf16.msra.mxu0 %v5933_v18  ;;  %v5999_v18 = vld [vmem:[%s6432_s29 + $0xee0] ss:$8 sps:$4 sm:$0xff]  }
 0x22f   : > { %4226 = vmatpush2.bf16.msra.mxu1 %v5936_v48  ;;  %4186 = vmatprep.subr.bf16.mxu0 %v5941_v49  ;;  %v6002_v48 = vld [vmem:[%s6432_s29 + $0xfe0] ss:$8 sps:$4 sm:$0xff]   ;;  %v6007_v49 = vld [vmem:[%s6432_s29 + $0xed4] ss:$8 sps:$4 sm:$0xff]  }
 0x230   : > { %4227 = vmatprep.subr.bf16.mxu1 %v5944_v50  ;;  %v6010_v50 = vld [vmem:[%s6432_s29 + $0xfd4] ss:$8 sps:$4 sm:$0xff]  }
 0x232   : > { %4187 = vmatpush2.bf16.msra.mxu0 %v5939_v54  ;;  %v6013_v54 = vld [vmem:[%s6432_s29 + $0xec4] ss:$8 sps:$4 sm:$0xff]  }
 0x233   : > { %4228 = vmatpush2.bf16.msra.mxu1 %v5942_v56  ;;  %4238 = vmatprep.subr.bf16.mxu0 %v5947_v58  ;;  %v6016_v56 = vld [vmem:[%s6432_s29 + $0xfc4] ss:$8 sps:$4 sm:$0xff]   ;;  %v6011_v58 = vld [vmem:[%s6432_s29 + $0xec0] ss:$8 sps:$4 sm:$0xff]  }
 0x234   : > { %4279 = vmatprep.subr.bf16.mxu1 %v5950_v59  ;;  %v6014_v59 = vld [vmem:[%s6432_s29 + $0xfc0] ss:$8 sps:$4 sm:$0xff]  }
 0x235   : > { %v3944_v39 = vpop.f32.mrf.mxu0  ;;  %4189 = vmatmul.mubr.bf16.vlgmr.msra.gmra.mxu0 %v1046_v28  ;;  %v6008_v28 = vld [vmem:[%s6432_s29 + $0xfd0] ss:$8 sps:$4 sm:$0xff]  }
 0x236   : > { %v3985_v2 = vpop.f32.mrf.mxu1  ;;  %4230 = vmatmul.mubr.bf16.vlgmr.msra.gmra.mxu1 %v1068_v31  ;;  %v3945_v3 = vadd.f32 %v3944_v39, %v6937_v52  ;;  %4239 = vmatpush1.bf16.msra.mxu0 %v5945_v60  ;;  %v6022_v31 = vld [vmem:[%s6432_s29 + $0xfb4] ss:$8 sps:$4 sm:$0xff]   ;;  %v6017_v60 = vld [vmem:[%s6432_s29 + $0xeb0] ss:$8 sps:$4 sm:$0xff]   ;;  %v6026_v39 = vld [vmem:[%s6432_s29 + $0xfa0] ss:$8 sps:$4 sm:$0xff]  }
 0x237   : > { %4280 = vmatpush1.bf16.msra.mxu1 %v5948_v61  ;;  %v3946_v7 = vpop.f32.mrf.mxu0  ;;  %4240 = vmatprep.subr.bf16.mxu0 %v5953_v23  ;;  %v6020_v61 = vld [vmem:[%s6432_s29 + $0xfb0] ss:$8 sps:$4 sm:$0xff]   ;;  %v6025_v23 = vld [vmem:[%s6432_s29 + $0xea4] ss:$8 sps:$4 sm:$0xff]  }
 0x238   : > { %v3987_v8 = vpop.f32.mrf.mxu1  ;;  %4281 = vmatprep.subr.bf16.mxu1 %v5956_v62  ;;  %v7017_v11 = vadd.f32 %v3985_v2, %v3945_v3  ;;  %v3947_v12 = vadd.f32 %v3946_v7, %v6940_v55  ;;  %4270 = vmatprep.mubr.bf16.mxu0 %v1067_v33  ;;  %v5965_v55 = vld [vmem:[%s6432_s29 + $0xe44] ss:$8 sps:$4 sm:$0xff]   ;;  %v6019_v33 = vld [vmem:[%s6432_s29 + $0xeb4] ss:$8 sps:$4 sm:$0xff]  }
 0x239   : > { %4311 = vmatprep.mubr.bf16.mxu1 %v1071_v63  ;;  %v3948_v52 = vpop.f32.mrf.mxu0  ;;  %v6028_v62 = vld [vmem:[%s6432_s29 + $0xfa4] ss:$8 sps:$4 sm:$0xff]   ;;  %v6023_v63 = vld [vmem:[%s6432_s29 + $0xea0] ss:$8 sps:$4 sm:$0xff]   ;;  %v6031_v2 = vld [vmem:[%s6432_s29 + $0xe94] ss:$8 sps:$4 sm:$0xff]  }
 0x23a   : > { %v3989_v13 = vpop.f32.mrf.mxu1  ;;  %v7020_v15 = vadd.f32 %v3987_v8, %v3947_v12  ;;  %4241 = vmatpush1.bf16.msra.mxu0 %v5951_v4  ;;  %v6034_v3 = vld [vmem:[%s6432_s29 + $0xf94] ss:$8 sps:$4 sm:$0xff]   ;;  %v6029_v4 = vld [vmem:[%s6432_s29 + $0xe90] ss:$8 sps:$4 sm:$0xff]   ;;  %v6037_v7 = vld [vmem:[%s6432_s29 + $0xe84] ss:$8 sps:$4 sm:$0xff]  }
 0x23b   : > { %4282 = vmatpush1.bf16.msra.mxu1 %v5954_v5  ;;  %v3949_v17 = vpop.f32.mrf.mxu0  ;;  %4242 = vmatprep.subr.bf16.mxu0 %v5959_v9  ;;  %v6032_v5 = vld [vmem:[%s6432_s29 + $0xf90] ss:$8 sps:$4 sm:$0xff]   ;;  %v6040_v8 = vld [vmem:[%s6432_s29 + $0xf84] ss:$8 sps:$4 sm:$0xff]   ;;  %v1053_v9 = vrot.slane %v6993_v47, %v6508_v57  ;;  %v6038_v12 = vld [vmem:[%s6432_s29 + $0xf80] ss:$8 sps:$4 sm:$0xff]  }
 0x23c   : > { %v3990_v19 = vpop.f32.mrf.mxu1  ;;  %4283 = vmatprep.subr.bf16.mxu1 %v5962_v10  ;;  %v6035_v10 = vld [vmem:[%s6432_s29 + $0xe80] ss:$8 sps:$4 sm:$0xff]  }
 0x23d   : > { %v1069_v52 = vcombine.high %v1053_v9, %v1053_v9 }
 0x23e   : > { %4243 = vmatpush1.bf16.msra.mxu0 %v5957_v16 }
 0x23f   : > { %4284 = vmatpush1.bf16.msra.mxu1 %v5960_v43  ;;  %4244 = vmatprep.subr.bf16.mxu0 %v5965_v55 }
 0x240   : > { %4285 = vmatprep.subr.bf16.mxu1 %v5968_v20 }
 0x242   : > { %4245 = vmatpush1.bf16.msra.mxu0 %v5963_v21 }
 0x243   : > { %4286 = vmatpush1.bf16.msra.mxu1 %v5966_v22  ;;  %4246 = vmatprep.subr.bf16.mxu0 %v5971_v24 }
 0x244   : > { %4287 = vmatprep.subr.bf16.mxu1 %v5974_v25 }
 0x246   : > { %4247 = vmatpush1.bf16.msra.mxu0 %v5969_v26 }
 0x247   : > { %4288 = vmatpush1.bf16.msra.mxu1 %v5972_v27  ;;  %4248 = vmatprep.subr.bf16.mxu0 %v5977_v29 }
 0x248   : > { %4289 = vmatprep.subr.bf16.mxu1 %v5980_v1 }
 0x24a   : > { %4249 = vmatpush1.bf16.msra.mxu0 %v5975_v30 }
 0x24b   : > { %4290 = vmatpush1.bf16.msra.mxu1 %v5978_v32  ;;  %4250 = vmatprep.subr.bf16.mxu0 %v5983_v34 }
 0x24c   : > { %4291 = vmatprep.subr.bf16.mxu1 %v5986_v35 }
 0x24e   : > { %4251 = vmatpush1.bf16.msra.mxu0 %v5981_v14 }
 0x24f   : > { %4292 = vmatpush1.bf16.msra.mxu1 %v5984_v6  ;;  %4252 = vmatprep.subr.bf16.mxu0 %v5989_v36 }
 0x250   : > { %4293 = vmatprep.subr.bf16.mxu1 %v5992_v38 }
 0x252   : > { %4253 = vmatpush1.bf16.msra.mxu0 %v5987_v0 }
 0x253   : > { %4294 = vmatpush1.bf16.msra.mxu1 %v5990_v40  ;;  %4254 = vmatprep.subr.bf16.mxu0 %v5995_v41 }
 0x254   : > { %4295 = vmatprep.subr.bf16.mxu1 %v5998_v42 }
 0x256   : > { %4255 = vmatpush2.bf16.msra.mxu0 %v5993_v44 }
 0x257   : > { %4296 = vmatpush2.bf16.msra.mxu1 %v5996_v45  ;;  %4256 = vmatprep.subr.bf16.mxu0 %v6001_v46 }
 0x258   : > { %4297 = vmatprep.subr.bf16.mxu1 %v6004_v37 }
 0x25a   : > { %4257 = vmatpush2.bf16.msra.mxu0 %v5999_v18  ;;  %v6229_v18 = vmov 1983009808  }
 0x25b   : > { %4298 = vmatpush2.bf16.msra.mxu1 %v6002_v48  ;;  %4258 = vmatprep.subr.bf16.mxu0 %v6007_v49  ;;  %v4324_v48 = vunpack.c.l.s4 %v6229_v18 }
 0x25c   : > { %4299 = vmatprep.subr.bf16.mxu1 %v6010_v50 }
 0x25e   : > { %4259 = vmatpush2.bf16.msra.mxu0 %v6005_v53 }
 0x25f   : > { %4300 = vmatpush2.bf16.msra.mxu1 %v6008_v28  ;;  %4260 = vmatprep.subr.bf16.mxu0 %v6013_v54  ;;  %v4325_v54 = vunpack.c.0.s8 %v4324_v48 }
 0x260   : > { %4301 = vmatprep.subr.bf16.mxu1 %v6016_v56 }
 0x262   : > { %4261 = vmatpush2.bf16.msra.mxu0 %v6011_v58 }
 0x263   : > { %4302 = vmatpush2.bf16.msra.mxu1 %v6014_v59  ;;  %4262 = vmatprep.subr.bf16.mxu0 %v6019_v33 }
 0x264   : > { %4303 = vmatprep.subr.bf16.mxu1 %v6022_v31 }
 0x266   : > { %4263 = vmatpush2.bf16.msra.mxu0 %v6017_v60 }
 0x267   : > { %4304 = vmatpush2.bf16.msra.mxu1 %v6020_v61  ;;  %4264 = vmatprep.subr.bf16.mxu0 %v6025_v23  ;;  %v4328_v23 = vsub.s32 %v4325_v54, %v6500_v51 }
 0x268   : > { %4305 = vmatprep.subr.bf16.mxu1 %v6028_v62 }
 0x26a   : > { %4265 = vmatpush2.bf16.msra.mxu0 %v6023_v63 }
 0x26b   : > { %4306 = vmatpush2.bf16.msra.mxu1 %v6026_v39  ;;  %4266 = vmatprep.subr.bf16.mxu0 %v6031_v2  ;;  %v355_v2 = vld [vmem:[#allocation2] sm:$0xf] }
 0x26c   : > { %4307 = vmatprep.subr.bf16.mxu1 %v6034_v3 }
 0x26e   : > { %4267 = vmatpush2.bf16.msra.mxu0 %v6029_v4 }
 0x26f   : > { %4308 = vmatpush2.bf16.msra.mxu1 %v6032_v5  ;;  %4268 = vmatprep.subr.bf16.mxu0 %v6037_v7 }
 0x270   : > { %4309 = vmatprep.subr.bf16.mxu1 %v6040_v8 }
 0x272   : > { %4269 = vmatpush2.bf16.msra.mxu0 %v6035_v10 }
 0x273   : > { %4310 = vmatpush2.bf16.msra.mxu1 %v6038_v12 }
 0x275   : > { %v4026_v13 = vpop.f32.mrf.mxu0  ;;  %4271 = vmatmul.mubr.bf16.vlgmr.msra.gmra.mxu0 %v1053_v9 }
 0x276   : > { %v4067_v16 = vpop.f32.mrf.mxu1  ;;  %4312 = vmatmul.mubr.bf16.vlgmr.msra.gmra.mxu1 %v1069_v52  ;;  %v4027_v43 = vadd.f32 %v4026_v13, %v7017_v11 }
 0x277   : > { %v4028_v17 = vpop.f32.mrf.mxu0 }
 0x278   : > { %v4069_v19 = vpop.f32.mrf.mxu1  ;;  %v4068_v55 = vadd.f32 %v4067_v16, %v4027_v43  ;;  %v4029_v57 = vadd.f32 %v4028_v17, %v7020_v15 }
 0x279   : > { %v4030_v47 = vpop.f32.mrf.mxu0 }
 0x27a   : > { %v4071_v20 = vpop.f32.mrf.mxu1  ;;  %v4070_v21 = vadd.f32 %v4069_v19, %v4029_v57 }
 0x27b   : > { %v4031_v22 = vpop.f32.mrf.mxu0 }
 0x27c   : > { %v4072_v24 = vpop.f32.mrf.mxu1 }
 0x2b5   : > { %v4108_v25 = vpop.f32.mrf.mxu0 }
 0x2b6   : > { %v4149_v26 = vpop.f32.mrf.mxu1  ;;  %v4109_v27 = vadd.f32 %v4108_v25, %v4068_v55 }
 0x2b7   : > { %v4110_v29 = vpop.f32.mrf.mxu0 }
 0x2b8   : > { %v4151_v1 = vpop.f32.mrf.mxu1  ;;  %v4150_v30 = vadd.f32 %v4149_v26, %v4109_v27  ;;  %v4111_v32 = vadd.f32 %v4110_v29, %v4070_v21 }
 0x2b9   : > { %v4112_v34 = vpop.f32.mrf.mxu0 }
 0x2ba   : > { %v4153_v35 = vpop.f32.mrf.mxu1  ;;  %v4152_v11 = vadd.f32 %v4151_v1, %v4111_v32 }
 0x2bb   : > { %v4113_v14 = vpop.f32.mrf.mxu0 }
 0x2bc   : > { %v4154_v6 = vpop.f32.mrf.mxu1 }
 0x2f5   : > { %v4190_v36 = vpop.f32.mrf.mxu0 }
 0x2f6   : > { %v4231_v38 = vpop.f32.mrf.mxu1  ;;  %v4191_v15 = vadd.f32 %v4190_v36, %v4150_v30 }
 0x2f7   : > { %v4192_v0 = vpop.f32.mrf.mxu0 }
 0x2f8   : > { %v4233_v40 = vpop.f32.mrf.mxu1  ;;  %v4232_v41 = vadd.f32 %v4231_v38, %v4191_v15  ;;  %v4193_v37 = vadd.f32 %v4192_v0, %v4152_v11 }
 0x2f9   : > { %v4194_v42 = vpop.f32.mrf.mxu0 }
 0x2fa   : > { %v4235_v44 = vpop.f32.mrf.mxu1  ;;  %v4234_v53 = vadd.f32 %v4233_v40, %v4193_v37 }
 0x2fb   : > { %v4195_v45 = vpop.f32.mrf.mxu0 }
 0x2fc   : > { %v4236_v46 = vpop.f32.mrf.mxu1 }
 0x335   : > { %v4272_v49 = vpop.f32.mrf.mxu0 }
 0x336   : > { %v4313_v50 = vpop.f32.mrf.mxu1  ;;  %v4273_v28 = vadd.f32 %v4272_v49, %v4232_v41 }
 0x337   : > { %v4274_v56 = vpop.f32.mrf.mxu0 }
 0x338   : > { %v4315_v58 = vpop.f32.mrf.mxu1  ;;  %v4275_v59 = vadd.f32 %v4274_v56, %v4234_v53  ;;  %v4314_v60 = vadd.f32 %v4313_v50, %v4273_v28 }
 0x339   : > { %v4276_v33 = vpop.f32.mrf.mxu0 }
 0x33a   : > { %v4317_v31 = vpop.f32.mrf.mxu1  ;;  %v4316_v61 = vadd.f32 %v4315_v58, %v4275_v59 }
 0x33b   : > { %v4277_v62 = vpop.f32.mrf.mxu0 }
 0x33c   : > { %v4318_v63 = vpop.f32.mrf.mxu1  ;;  %v4322_v39 = vcombine.low %v4314_v60, %v4316_v61 }
 0x33e   : > { %v4329_v3 = vrot.slane %v4322_v39, %v4328_v23  ;;  %4336 = sbr.rel (%p5119_p2) target bundleno = 1066 (0x42a), region = 56 }
 0x340   : > { %v4331_v4 = vadd.f32 %v4329_v3, %v355_v2 }
 0x342   : > { %4332 = vst [vmem:[#allocation2] sm:$0xf] %v4331_v4 }
 0x343   : > { %v4370_v51 = vld [vmem:[%s6458_s28 + $0xf8] sm:$0xff]  ;;  %v4369_v7 = vld [vmem:[%s6458_s28 + $0xf0] sm:$0xff]  ;;  %v4368_v9 = vld [vmem:[%s6458_s28 + $0xe8] sm:$0xff] }
 0x344   : > { %v4354_v5 = vld [vmem:[%s6458_s28 + $0x78] sm:$0xff]  ;;  %5125 = vmatprep.subr.mxu0 %v4370_v51  ;;  %v4353_v8 = vld [vmem:[%s6458_s28 + $0x70] sm:$0xff]  ;;  %v4352_v10 = vld [vmem:[%s6458_s28 + $0x68] sm:$0xff] }
 0x345   : > { %5126 = vmatpush3.msra.mxu0 %v4354_v5  ;;  %v4367_v12 = vld [vmem:[%s6458_s28 + $0xe0] sm:$0xff]  ;;  %v4366_v13 = vld [vmem:[%s6458_s28 + $0xd8] sm:$0xff]  ;;  %v4365_v43 = vld [vmem:[%s6458_s28 + $0xd0] sm:$0xff] }
 0x346   : > { %5127 = vmatprep.subr.mxu0 %v4369_v7  ;;  %v4351_v52 = vld [vmem:[%s6458_s28 + $0x60] sm:$0xff]  ;;  %v4350_v16 = vld [vmem:[%s6458_s28 + $0x58] sm:$0xff]  ;;  %v4349_v17 = vld [vmem:[%s6458_s28 + $0x50] sm:$0xff] }
 0x347   : > { %5128 = vmatpush3.msra.mxu0 %v4353_v8  ;;  %v4364_v19 = vld [vmem:[%s6458_s28 + $0xc8] sm:$0xff]  ;;  %v4363_v20 = vld [vmem:[%s6458_s28 + $0xc0] sm:$0xff]  ;;  %v4362_v24 = vld [vmem:[%s6458_s28 + $0xb8] sm:$0xff] }
 0x348   : > { %5129 = vmatprep.subr.mxu0 %v4368_v9  ;;  %v4348_v57 = vld [vmem:[%s6458_s28 + $0x48] sm:$0xff]  ;;  %v4347_v21 = vld [vmem:[%s6458_s28 + $0x40] sm:$0xff]  ;;  %v4346_v25 = vld [vmem:[%s6458_s28 + $0x38] sm:$0xff] }
 0x349   : > { %5130 = vmatpush3.msra.mxu0 %v4352_v10  ;;  %v4337_v55 = vld [vmem:[#allocation2] sm:$0xf]  ;;  %v4361_v27 = vld [vmem:[%s6458_s28 + $0xb0] sm:$0xff]  ;;  %v4360_v1 = vld [vmem:[%s6458_s28 + $0xa8] sm:$0xff] }
 0x34a   : > { %5131 = vmatprep.subr.mxu0 %v4367_v12  ;;  %v4338_v47 = vmax.f32 %v4337_v55, 0.0  ;;  %v4345_v29 = vld [vmem:[%s6458_s28 + $0x30] sm:$0xff]  ;;  %v4344_v30 = vld [vmem:[%s6458_s28 + $0x28] sm:$0xff]  ;;  %v4359_v32 = vld [vmem:[%s6458_s28 + $0xa0] sm:$0xff] }
 0x34b   : > { %5132 = vmatpush3.msra.mxu0 %v4351_v52  ;;  %v4343_v34 = vld [vmem:[%s6458_s28 + $0x20] sm:$0xff]  ;;  %v4358_v35 = vld [vmem:[%s6458_s28 + $0x98] sm:$0xff]  ;;  %v4357_v14 = vld [vmem:[%s6458_s28 + $0x90] sm:$0xff] }
 0x34c   : > { %5133 = vmatprep.subr.mxu0 %v4366_v13  ;;  %v4378_v22 = vrot.slane %v4338_v47, %v4328_v23  ;;  %v4342_v11 = vld [vmem:[%s6458_s28 + $0x18] sm:$0xff]  ;;  %v4341_v6 = vld [vmem:[%s6458_s28 + $0x10] sm:$0xff]  ;;  %v4356_v36 = vld [vmem:[%s6458_s28 + $0x88] sm:$0xff] }
 0x34d   : > { %5134 = vmatpush3.msra.mxu0 %v4350_v16  ;;  %v4340_v38 = vld [vmem:[%s6458_s28 + $0x8] sm:$0xff]  ;;  %v4355_v15 = vld [vmem:[%s6458_s28 + $0x80] sm:$0xff] }
 0x34e   : > { %5135 = vmatprep.subr.mxu0 %v4365_v43  ;;  %v4379_v26 = vcombine.high %v4378_v22, %v4378_v22  ;;  %v4339_v0 = vld [vmem:[%s6458_s28] sm:$0xff] }
 0x34f   : > { %5136 = vmatpush3.msra.mxu0 %v4349_v17 }
 0x350   : > { %5137 = vmatprep.subr.mxu0 %v4364_v19  ;;  %4446 = vmatprep.mubr.f32.mxu0 %v4379_v26 }
 0x351   : > { %5138 = vmatpush3.msra.mxu0 %v4348_v57 }
 0x352   : > { %5139 = vmatprep.subr.mxu0 %v4363_v20 }
 0x353   : > { %5140 = vmatpush3.msra.mxu0 %v4347_v21 }
 0x354   : > { %5141 = vmatprep.subr.mxu0 %v4362_v24 }
 0x355   : > { %5142 = vmatpush3.msra.mxu0 %v4346_v25 }
 0x356   : > { %5143 = vmatprep.subr.mxu0 %v4361_v27 }
 0x357   : > { %5144 = vmatpush3.msra.mxu0 %v4345_v29 }
 0x358   : > { %5145 = vmatprep.subr.mxu0 %v4360_v1 }
 0x359   : > { %5146 = vmatpush3.msra.mxu0 %v4344_v30 }
 0x35a   : > { %5147 = vmatprep.subr.mxu0 %v4359_v32 }
 0x35b   : > { %5148 = vmatpush3.msra.mxu0 %v4343_v34 }
 0x35c   : > { %5149 = vmatprep.subr.mxu0 %v4358_v35 }
 0x35d   : > { %5150 = vmatpush3.msra.mxu0 %v4342_v11 }
 0x35e   : > { %5151 = vmatprep.subr.mxu0 %v4357_v14 }
 0x35f   : > { %5152 = vmatpush3.msra.mxu0 %v4341_v6 }
 0x360   : > { %5153 = vmatprep.subr.mxu0 %v4356_v36 }
 0x361   : > { %5154 = vmatpush3.msra.mxu0 %v4340_v38 }
 0x362   : > { %5155 = vmatprep.subr.mxu0 %v4355_v15 }
 0x363   : > { %5156 = vmatpush3.msra.mxu0 %v4339_v0 }
 0x364   : > { %4447 = vmatmul.mubr.f32.vlgmr.msra.gmra.mxu0 %v4378_v22 }
 0x424   : > { %v5157_v40 = vpop.f32.mrf.mxu0 }
 0x426   : > { %v5158_v41 = vpop.f32.mrf.mxu0 }
 0x427   : > { %v5159_v42 = vadd.f32 %v5158_v41, %v5157_v40 }
 0x429   : > { %4452 = vst [vmem:[%s6456_s18] sm:$0x3] %v5159_v42 }
 0x42a PF: > { %s20_s25 = sadd.s32 1, %s6220_s25   ;;  %s7181_s21 = sld [smem:[#allocation10_spill]] }
 0x42b   : > { %p17_p4 = scmp.ge.s32.totalorder %s20_s25, 10   ;;  %s7182_s17 = sld [smem:[#allocation15_spill]] }
 0x42c   : > { %s7183_s22 = sld [smem:[#allocation11_spill]]  ;;  %s7188_s15 = smov %s6184_s16 }
 0x42d   : > { %s7184_s20 = sld [smem:[#allocation16_spill]]  ;;  %s7190_s18 = smov %s6196_s19 }
 0x42e   : > { %s7185_s11 = sld [smem:[#allocation12_spill]] }
 0x42f   : > { %s7186_s23 = sld [smem:[#allocation13_spill]] }
 0x430   : > { %s7187_s2 = sld [smem:[#allocation14_spill]]  ;;  %s7189_s16 = smov %s7181_s21 }
 0x432   : > { %s7191_s19 = smov %s7183_s22  ;;  %s7193_s22 = smov %s6216_s24 }
 0x433   :  { %19 = sbr.rel (!%p17_p4) target bundleno = 13 (0xd), region = 111 }
 0x434   : > { %s7192_s21 = smov %s7185_s11 }
 0x436   : > { %s7194_s24 = smov %s7187_s2 }
 0x438   :  { %4472 = vsyncpa [#allocation4], 1 }
 0x439   :  { %4474 = vsyncpa [#allocation4 + $0x1], 1 }
 0x43a   :  { %4475 = vsyncpa [#allocation6], 1 }
 0x43b   :  { %4477 = vsyncpa [#allocation6 + $0x1], 1 }

</bundles_post_ra>
